<compile_context>
chip_gen: v7x
topology: tpu7x:2x2x1
jax: 0.10.0
libtpu: 0.0.40
codegen_flags: <defaults>
</compile_context>

<pallas_src>
import functools

import jax
import jax.numpy as jnp
from jax import lax
from jax.experimental import pallas as pl
from jax.experimental.pallas import tpu as pltpu


# ----------------------------------------------------------------------------
# Kernel: grid = (batch_tiles, layers).  Activation carried in xo_ref across
# the layer axis; per-layer weights streamed (bf16) via layer-indexed specs.
# ----------------------------------------------------------------------------
def _transformer_layers_kernel(x_ref,                       # (TB, L, E) f32
                               ln1_g, ln1_b,                # (1, 1, E) f32
                               wqkv_t, bqkv,                # (1, E, 3E) bf16, (1, 1, 3E) f32
                               wo_t, bo,                    # (1, E, E) bf16,  (1, 1, E) f32
                               ln2_g, ln2_b,                # (1, 1, E) f32
                               wfc_t, bfc,                  # (1, E, 4E) bf16, (1, 1, 4E) f32
                               wproj_t, bproj,              # (1, 4E, E) bf16, (1, 1, E) f32
                               xo_ref,                      # (TB, L, E) f32 (carry + output)
                               aw_ref,                      # (TB, 1, L, L) f32
                               *, n_head: int):
    layer = pl.program_id(1)

    # Layer 0: seed the resident activation carry from the input block.
    @pl.when(layer == 0)
    def _():
        xo_ref[...] = x_ref[...]

    TB, L, E = xo_ref.shape
    M = TB * L
    Dh = E // n_head
    scale = 1.0 / float(Dh) ** 0.5
    bf16 = jnp.bfloat16

    def layernorm(v, g, b):                       # f32 elementwise (v5e-safe)
        mu = jnp.mean(v, axis=-1, keepdims=True)
        var = jnp.mean((v - mu) ** 2, axis=-1, keepdims=True)
        return (v - mu) * lax.rsqrt(var + 1e-5) * g + b

    x3 = xo_ref[...].astype(jnp.float32)          # (TB, L, E) carry
    x = x3.reshape(M, E)                          # flatten: matmul M = TB*L

    # ---- attention branch: LN1 -> fused QKV -> per-head attn -> out proj ---
    xln = layernorm(x, ln1_g[0], ln1_b[0])
    qkv = jnp.dot(xln.astype(bf16), wqkv_t[0],
                  preferred_element_type=jnp.float32) + bqkv[0]     # (M, 3E) f32
    q3 = (qkv[:, 0:E] * scale).reshape(TB, L, E)  # scale applied once to q
    k3 = qkv[:, E:2 * E].reshape(TB, L, E)
    v3 = qkv[:, 2 * E:3 * E].reshape(TB, L, E)

    wo = wo_t[0]                                  # (E, E) bf16
    attn = jnp.zeros((M, E), jnp.float32)
    w_sum = jnp.zeros((TB, L, L), jnp.float32)
    # TODO(synk): optional attn_mask (None in this config) is not applied;
    # it would be an additive mask on `s` before the softmax.
    for h in range(n_head):                       # static loop; one (TB,L,L) live
        sl = slice(h * Dh, (h + 1) * Dh)
        s = jnp.einsum("bld,bmd->blm", q3[:, :, sl], k3[:, :, sl],
                       preferred_element_type=jnp.float32)          # (TB, L, L)
        s = s - jnp.max(s, axis=-1, keepdims=True)
        e = jnp.exp(s)
        p = e * pl.reciprocal(jnp.sum(e, axis=-1, keepdims=True), approx=True)
        w_sum = w_sum + p
        ctx = jnp.einsum("blm,bmd->bld", p, v3[:, :, sl],
                         preferred_element_type=jnp.float32)        # (TB, L, Dh)
        # accumulate the output projection per head -> no (L, E) concat
        attn = attn + jnp.dot(ctx.reshape(M, Dh).astype(bf16), wo[sl, :],
                              preferred_element_type=jnp.float32)
    x1 = x + attn + bo[0]

    # ---- MLP branch: LN2 -> FC(4E) -> QuickGELU -> proj --------------------
    x2ln = layernorm(x1, ln2_g[0], ln2_b[0])
    hid = jnp.dot(x2ln.astype(bf16), wfc_t[0],
                  preferred_element_type=jnp.float32) + bfc[0]      # (M, 4E) f32
    hid = hid * jax.nn.sigmoid(1.702 * hid)       # QuickGELU in f32
    mlp = jnp.dot(hid.astype(bf16), wproj_t[0],
                  preferred_element_type=jnp.float32) + bproj[0]
    x2 = x1 + mlp

    xo_ref[...] = x2.reshape(TB, L, E).astype(xo_ref.dtype)
    aw_ref[...] = (w_sum * (1.0 / n_head)).reshape(TB, 1, L, L).astype(aw_ref.dtype)


# ----------------------------------------------------------------------------
# Wrapper helpers
# ----------------------------------------------------------------------------
def _pick_batch_tile(B, L):
    """Batch tile so the matmul M dim (TB*L) fills the MXU; keep >= 2 grid
    tiles for the two v7x TensorCores when that doesn't hurt MXU fill."""
    divs = [d for d in range(1, B + 1) if B % d == 0]
    target = max(1, -(-256 // max(L, 1)))         # ceil(256 / L)
    cands = [d for d in divs if d >= target]
    tb = min(cands) if cands else max(divs)
    if B // tb < 2:
        alt = [d for d in divs if d < tb and d * L >= 256]
        if alt:
            tb = max(alt)
    return tb


def _vmem_limit_bytes(TB, L, E):
    """Rough resident footprint (bf16 weights double-buffered + activations),
    clamped to [32 MiB, 64 MiB] so it is valid on v5e/v6e/v7x."""
    bf, f32 = 2, 4
    M = TB * L
    weights = 12 * E * E * bf                     # qkv + out + fc + proj (bf16)
    vecs = 17 * E * f32                           # LN params + biases
    io = 2 * M * E * f32 + 2 * TB * L * L * f32   # x block, carry, attn weights
    acts = M * (3 * E + 4 * E + 3 * E) * f32      # qkv, hidden, live temporaries
    est = 2 * (weights + vecs + io) + acts        # x2 for double buffering
    return int(min(64 * 2 ** 20, max(32 * 2 ** 20, int(1.5 * est))))


def _stack_and_prepare(layer_params):
    """Stack per-layer params with a leading layer axis; matmul weights are
    pre-transposed (x @ W.T == x @ W_t) and stored in bf16; LN params/biases
    stay f32 with shape (layers, 1, D) so block last-two dims == full dims."""
    bf = jnp.bfloat16
    f32 = jnp.float32

    def vec(name):
        return jnp.stack([p[name] for p in layer_params])[:, None, :].astype(f32)

    def mat_t(name):
        return jnp.stack([p[name].T for p in layer_params]).astype(bf)

    return [
        vec("ln1_g"), vec("ln1_b"),
        mat_t("wqkv"), vec("bqkv"),
        mat_t("wo"), vec("bo"),
        vec("ln2_g"), vec("ln2_b"),
        mat_t("wfc"), vec("bfc"),
        mat_t("wproj"), vec("bproj"),
    ]


def transformer_forward(x_lne, layer_params, n_head):
    """x_lne: (L, N, E) like the PyTorch module.
    Returns (x_out (L, N, E), weights (N, layers, L, L))."""
    L, N, E = x_lne.shape
    assert E % n_head == 0
    n_layers = len(layer_params)
    B = N
    x_ble = jnp.transpose(x_lne, (1, 0, 2))       # (B, L, E)

    TB = _pick_batch_tile(B, L)
    n_bt = B // TB

    stacked = _stack_and_prepare(layer_params)

    # TODO(synk): for very large widths on v7x (64 MiB VMEM), tile wfc_t /
    # wproj_t over the 4E hidden dim with an extra "arbitrary" grid axis
    # instead of keeping the full MLP weights resident per layer step.
    def layer_spec(a):
        rest = a.ndim - 1
        return pl.BlockSpec((1,) + a.shape[1:],
                            lambda b, l, _r=rest: (l,) + (0,) * _r)

    kernel = functools.partial(_transformer_layers_kernel, n_head=n_head)

    x_out, attn_w = pl.pallas_call(
        kernel,
        out_shape=(jax.ShapeDtypeStruct((B, L, E), x_ble.dtype),
                   jax.ShapeDtypeStruct((B, n_layers, L, L), jnp.float32)),
        grid=(n_bt, n_layers),
        in_specs=[pl.BlockSpec((TB, L, E), lambda b, l: (b, 0, 0))]
                 + [layer_spec(a) for a in stacked],
        out_specs=(pl.BlockSpec((TB, L, E), lambda b, l: (b, 0, 0)),
                   pl.BlockSpec((TB, 1, L, L), lambda b, l: (b, l, 0, 0))),
        compiler_params=pltpu.CompilerParams(
            dimension_semantics=("parallel", "arbitrary"),
            vmem_limit_bytes=_vmem_limit_bytes(TB, L, E)),
    )(x_ble, *stacked)

    return jnp.transpose(x_out, (1, 0, 2)), attn_w


# ----------------------------------------------------------------------------
# Deterministic parameter init (synthetic, PyTorch-style layout).
# ----------------------------------------------------------------------------
def init_layer_params(key, width):
    E = width
    ks = jax.random.split(key, 6)
    s = 0.05
    return {
        "ln1_g": jnp.ones((E,), jnp.float32),
        "ln1_b": jnp.zeros((E,), jnp.float32),
        "wqkv":  (s * jax.random.normal(ks[0], (3 * E, E))).astype(jnp.float32),
        "bqkv":  (s * jax.random.normal(ks[1], (3 * E,))).astype(jnp.float32),
        "wo":    (s * jax.random.normal(ks[2], (E, E))).astype(jnp.float32),
        "bo":    jnp.zeros((E,), jnp.float32),
        "ln2_g": jnp.ones((E,), jnp.float32),
        "ln2_b": jnp.zeros((E,), jnp.float32),
        "wfc":   (s * jax.random.normal(ks[3], (4 * E, E))).astype(jnp.float32),
        "bfc":   (s * jax.random.normal(ks[4], (4 * E,))).astype(jnp.float32),
        "wproj": (s * jax.random.normal(ks[5], (E, 4 * E))).astype(jnp.float32),
        "bproj": jnp.zeros((E,), jnp.float32),
    }


# ----------------------------------------------------------------------------
# Pure-JAX mirror (same math: bf16 matmul operands, f32 accumulate/elementwise)
# ----------------------------------------------------------------------------
def _ref_block(x, p, n_head):
    E = x.shape[-1]
    Dh = E // n_head
    bf = jnp.bfloat16

    def ln(v, g, b):
        mu = v.mean(-1, keepdims=True)
        var = ((v - mu) ** 2).mean(-1, keepdims=True)
        return (v - mu) / jnp.sqrt(var + 1e-5) * g + b

    def mm(a, w_t):
        return jnp.dot(a.astype(bf), w_t.astype(bf),
                       preferred_element_type=jnp.float32)

    xln = ln(x, p["ln1_g"], p["ln1_b"])
    qkv = mm(xln, p["wqkv"].T) + p["bqkv"]
    q, k, v = jnp.split(qkv, 3, axis=-1)
    B, L, _ = x.shape
    q = q / Dh ** 0.5
    qh = q.reshape(B, L, n_head, Dh).transpose(0, 2, 1, 3)
    kh = k.reshape(B, L, n_head, Dh).transpose(0, 2, 1, 3)
    vh = v.reshape(B, L, n_head, Dh).transpose(0, 2, 1, 3)
    s = jnp.einsum("bhld,bhmd->bhlm", qh, kh)
    pw = jax.nn.softmax(s, axis=-1)
    ctx = jnp.einsum("bhlm,bhmd->bhld", pw, vh).transpose(0, 2, 1, 3).reshape(B, L, E)
    attn = mm(ctx, p["wo"].T) + p["bo"]
    x1 = x + attn
    x2ln = ln(x1, p["ln2_g"], p["ln2_b"])
    h = mm(x2ln, p["wfc"].T) + p["bfc"]
    h = h * jax.nn.sigmoid(1.702 * h)
    x2 = x1 + mm(h, p["wproj"].T) + p["bproj"]
    return x2, pw.mean(axis=1)


if __name__ == "__main__":
    SEQ, BATCH, WIDTH, HEADS, LAYERS = 8, 2, 32, 4, 2

    root = jax.random.PRNGKey(0)
    kx, *kls = jax.random.split(root, 1 + LAYERS)
    x = jax.random.normal(kx, (SEQ, BATCH, WIDTH), jnp.float32)   # (L, N, E)
    layer_params = [init_layer_params(k, WIDTH) for k in kls]

    x_out, weights = transformer_forward(x, layer_params, HEADS)
    x_out, weights = jax.block_until_ready((x_out, weights))

    # correctness sanity check vs a pure-JAX mirror of the same math
    xr = jnp.transpose(x, (1, 0, 2))
    ref_ws = []
    for p in layer_params:
        xr, aw = _ref_block(xr, p, HEADS)
        ref_ws.append(aw)
    ref_x = jnp.transpose(xr, (1, 0, 2))
    ref_w = jnp.stack(ref_ws, axis=1)

    assert x_out.shape == (SEQ, BATCH, WIDTH)
    assert weights.shape == (BATCH, LAYERS, SEQ, SEQ)
    assert jnp.allclose(x_out, ref_x, atol=1e-2, rtol=1e-2), \
        float(jnp.max(jnp.abs(x_out - ref_x)))
    assert jnp.allclose(weights, ref_w, atol=1e-2, rtol=1e-2), \
        float(jnp.max(jnp.abs(weights - ref_w)))

    print("KERNEL_OK")
</pallas_src>

<mosaic_0001>
module attributes {stable_mosaic.version = 11 : i64} {
  func.func @_transformer_layers_kernel(%arg0: i32, %arg1: i32, %arg2: memref<2x8x32xf32, #tpu.memory_space<vmem>>, %arg3: memref<1x1x32xf32, #tpu.memory_space<vmem>>, %arg4: memref<1x1x32xf32, #tpu.memory_space<vmem>>, %arg5: memref<1x32x96xbf16, #tpu.memory_space<vmem>>, %arg6: memref<1x1x96xf32, #tpu.memory_space<vmem>>, %arg7: memref<1x32x32xbf16, #tpu.memory_space<vmem>>, %arg8: memref<1x1x32xf32, #tpu.memory_space<vmem>>, %arg9: memref<1x1x32xf32, #tpu.memory_space<vmem>>, %arg10: memref<1x1x32xf32, #tpu.memory_space<vmem>>, %arg11: memref<1x32x128xbf16, #tpu.memory_space<vmem>>, %arg12: memref<1x1x128xf32, #tpu.memory_space<vmem>>, %arg13: memref<1x128x32xbf16, #tpu.memory_space<vmem>>, %arg14: memref<1x1x32xf32, #tpu.memory_space<vmem>>, %arg15: memref<2x8x32xf32, #tpu.memory_space<vmem>>, %arg16: memref<2x1x8x8xf32, #tpu.memory_space<vmem>>) attributes {dimension_semantics = [#tpu.dimension_semantics<parallel>, #tpu.dimension_semantics<arbitrary>], iteration_bounds = array<i64: 1, 2>, scalar_prefetch = 0 : i64, scratch_operands = 0 : i64, tpu.core_type = #tpu.core_type<tc>, window_params = [{transform_indices = @transform_0, window_bounds = array<i64: 2, 8, 32>}, {transform_indices = @transform_1, window_bounds = array<i64: 1, 1, 32>}, {transform_indices = @transform_2, window_bounds = array<i64: 1, 1, 32>}, {transform_indices = @transform_3, window_bounds = array<i64: 1, 32, 96>}, {transform_indices = @transform_4, window_bounds = array<i64: 1, 1, 96>}, {transform_indices = @transform_5, window_bounds = array<i64: 1, 32, 32>}, {transform_indices = @transform_6, window_bounds = array<i64: 1, 1, 32>}, {transform_indices = @transform_7, window_bounds = array<i64: 1, 1, 32>}, {transform_indices = @transform_8, window_bounds = array<i64: 1, 1, 32>}, {transform_indices = @transform_9, window_bounds = array<i64: 1, 32, 128>}, {transform_indices = @transform_10, window_bounds = array<i64: 1, 1, 128>}, {transform_indices = @transform_11, window_bounds = array<i64: 1, 128, 32>}, {transform_indices = @transform_12, window_bounds = array<i64: 1, 1, 32>}, {transform_indices = @transform_13, window_bounds = array<i64: 2, 8, 32>}, {transform_indices = @transform_14, window_bounds = array<i64: 2, 1, 8, 8>}]} {
    %c0_i32 = arith.constant 0 : i32
    %0 = arith.cmpi eq, %arg1, %c0_i32 : i32
    %1 = arith.extui %0 : i1 to i32
    %c0_i32_0 = arith.constant 0 : i32
    %2 = arith.cmpi ne, %1, %c0_i32_0 : i32
    scf.if %2 {
      %c0_84 = arith.constant 0 : index
      %c0_85 = arith.constant 0 : index
      %c0_86 = arith.constant 0 : index
      %197 = vector.load %arg2[%c0_84, %c0_85, %c0_86] : memref<2x8x32xf32, #tpu.memory_space<vmem>>, vector<2x8x32xf32>
      %c0_87 = arith.constant 0 : index
      %c0_88 = arith.constant 0 : index
      %c0_89 = arith.constant 0 : index
      %198 = vector.load %arg15[%c0_87, %c0_88, %c0_89] : memref<2x8x32xf32, #tpu.memory_space<vmem>>, vector<2x8x32xf32>
      tpu.vector_store %arg15[%c0_87, %c0_88, %c0_89], %197 {strides = array<i32>} : memref<2x8x32xf32, #tpu.memory_space<vmem>>, vector<2x8x32xf32>,
    } else {
    }
    %c0 = arith.constant 0 : index
    %c0_1 = arith.constant 0 : index
    %c0_2 = arith.constant 0 : index
    %3 = vector.load %arg15[%c0, %c0_1, %c0_2] : memref<2x8x32xf32, #tpu.memory_space<vmem>>, vector<2x8x32xf32>
    %4 = vector.shape_cast %3 : vector<2x8x32xf32> to vector<16x32xf32>
    %c0_3 = arith.constant 0 : index
    %c0_4 = arith.constant 0 : index
    %c0_5 = arith.constant 0 : index
    %5 = vector.load %arg3[%c0_3, %c0_4, %c0_5] : memref<1x1x32xf32, #tpu.memory_space<vmem>>, vector<1x1x32xf32>
    %6 = vector.shape_cast %5 : vector<1x1x32xf32> to vector<1x32xf32>
    %c0_6 = arith.constant 0 : index
    %c0_7 = arith.constant 0 : index
    %c0_8 = arith.constant 0 : index
    %7 = vector.load %arg4[%c0_6, %c0_7, %c0_8] : memref<1x1x32xf32, #tpu.memory_space<vmem>>, vector<1x1x32xf32>
    %8 = vector.shape_cast %7 : vector<1x1x32xf32> to vector<1x32xf32>
    %cst = arith.constant dense<0.000000e+00> : vector<16xf32>
    %9 = vector.multi_reduction <add>, %4, %cst [1] : vector<16x32xf32> to vector<16xf32>
    %10 = vector.shape_cast %9 : vector<16xf32> to vector<16x1xf32>
    %cst_9 = arith.constant 3.200000e+01 : f32
    %11 = vector.broadcast %cst_9 : f32 to vector<16x1xf32>
    %12 = arith.divf %10, %11 : vector<16x1xf32>
    %13 = vector.broadcast %12 : vector<16x1xf32> to vector<16x32xf32>
    %14 = arith.subf %4, %13 : vector<16x32xf32>
    %15 = arith.mulf %14, %14 : vector<16x32xf32>
    %cst_10 = arith.constant dense<0.000000e+00> : vector<16xf32>
    %16 = vector.multi_reduction <add>, %15, %cst_10 [1] : vector<16x32xf32> to vector<16xf32>
    %17 = vector.shape_cast %16 : vector<16xf32> to vector<16x1xf32>
    %cst_11 = arith.constant 3.200000e+01 : f32
    %18 = vector.broadcast %cst_11 : f32 to vector<16x1xf32>
    %19 = arith.divf %17, %18 : vector<16x1xf32>
    %20 = vector.broadcast %12 : vector<16x1xf32> to vector<16x32xf32>
    %21 = arith.subf %4, %20 : vector<16x32xf32>
    %cst_12 = arith.constant 9.99999974E-6 : f32
    %22 = vector.broadcast %cst_12 : f32 to vector<16x1xf32>
    %23 = arith.addf %19, %22 : vector<16x1xf32>
    %24 = math.rsqrt %23 : vector<16x1xf32>
    %25 = vector.broadcast %24 : vector<16x1xf32> to vector<16x32xf32>
    %26 = arith.mulf %21, %25 : vector<16x32xf32>
    %27 = vector.broadcast %6 : vector<1x32xf32> to vector<16x32xf32>
    %28 = arith.mulf %26, %27 : vector<16x32xf32>
    %29 = vector.broadcast %8 : vector<1x32xf32> to vector<16x32xf32>
    %30 = arith.addf %28, %29 : vector<16x32xf32>
    %31 = arith.truncf %30 : vector<16x32xf32> to vector<16x32xbf16>
    %c0_13 = arith.constant 0 : index
    %c0_14 = arith.constant 0 : index
    %c0_15 = arith.constant 0 : index
    %32 = vector.load %arg5[%c0_13, %c0_14, %c0_15] : memref<1x32x96xbf16, #tpu.memory_space<vmem>>, vector<1x32x96xbf16>
    %33 = vector.shape_cast %32 : vector<1x32x96xbf16> to vector<32x96xbf16>
    %cst_16 = arith.constant dense<0.000000e+00> : vector<16x96xf32>
    %34 = tpu.matmul %31, %33, %cst_16 {dimension_numbers = #tpu.dot_dimension_numbers<[1], [0], [0], [1], [0, 0, 1, 1], [], []>} : vector<16x32xbf16>, vector<32x96xbf16>, vector<16x96xf32> -> vector<16x96xf32>
    %c0_17 = arith.constant 0 : index
    %c0_18 = arith.constant 0 : index
    %c0_19 = arith.constant 0 : index
    %35 = vector.load %arg6[%c0_17, %c0_18, %c0_19] : memref<1x1x96xf32, #tpu.memory_space<vmem>>, vector<1x1x96xf32>
    %36 = vector.shape_cast %35 : vector<1x1x96xf32> to vector<1x96xf32>
    %37 = vector.broadcast %36 : vector<1x96xf32> to vector<16x96xf32>
    %38 = arith.addf %34, %37 : vector<16x96xf32>
    %39 = vector.extract_strided_slice %38 {offsets = [0, 0], sizes = [16, 32], strides = [1, 1]} : vector<16x96xf32> to vector<16x32xf32>
    %cst_20 = arith.constant 0.353553385 : f32
    %40 = vector.broadcast %cst_20 : f32 to vector<16x32xf32>
    %41 = arith.mulf %39, %40 : vector<16x32xf32>
    %42 = vector.shape_cast %41 : vector<16x32xf32> to vector<2x8x32xf32>
    %43 = vector.extract_strided_slice %38 {offsets = [0, 32], sizes = [16, 32], strides = [1, 1]} : vector<16x96xf32> to vector<16x32xf32>
    %44 = vector.shape_cast %43 : vector<16x32xf32> to vector<2x8x32xf32>
    %45 = vector.extract_strided_slice %38 {offsets = [0, 64], sizes = [16, 32], strides = [1, 1]} : vector<16x96xf32> to vector<16x32xf32>
    %46 = vector.shape_cast %45 : vector<16x32xf32> to vector<2x8x32xf32>
    %c0_21 = arith.constant 0 : index
    %c0_22 = arith.constant 0 : index
    %c0_23 = arith.constant 0 : index
    %47 = vector.load %arg7[%c0_21, %c0_22, %c0_23] : memref<1x32x32xbf16, #tpu.memory_space<vmem>>, vector<1x32x32xbf16>
    %48 = vector.shape_cast %47 : vector<1x32x32xbf16> to vector<32x32xbf16>
    %cst_24 = arith.constant 0.000000e+00 : f32
    %49 = vector.broadcast %cst_24 : f32 to vector<16x32xf32>
    %cst_25 = arith.constant 0.000000e+00 : f32
    %50 = vector.broadcast %cst_25 : f32 to vector<2x8x8xf32>
    %51 = vector.extract_strided_slice %42 {offsets = [0, 0, 0], sizes = [2, 8, 8], strides = [1, 1, 1]} : vector<2x8x32xf32> to vector<2x8x8xf32>
    %52 = vector.extract_strided_slice %44 {offsets = [0, 0, 0], sizes = [2, 8, 8], strides = [1, 1, 1]} : vector<2x8x32xf32> to vector<2x8x8xf32>
    "tpu.trace_start"() <{level = 10 : i32, message = "bld,bmd->blm"}> : () -> ()
    %cst_26 = arith.constant dense<0.000000e+00> : vector<2x8x8xf32>
    %53 = tpu.matmul %51, %52, %cst_26 {dimension_numbers = #tpu.dot_dimension_numbers<[2], [2], [1], [1], [0, 0, 0, 1, 1, 1], [0], [0]>} : vector<2x8x8xf32>, vector<2x8x8xf32>, vector<2x8x8xf32> -> vector<2x8x8xf32>
    "tpu.trace_stop"() : () -> ()
    %cst_27 = arith.constant dense<0xFF800000> : vector<2x8xf32>
    %54 = vector.multi_reduction <maximumf>, %53, %cst_27 [2] : vector<2x8x8xf32> to vector<2x8xf32>
    %55 = vector.shape_cast %54 : vector<2x8xf32> to vector<2x8x1xf32>
    %56 = vector.broadcast %55 : vector<2x8x1xf32> to vector<2x8x8xf32>
    %57 = arith.subf %53, %56 : vector<2x8x8xf32>
    %58 = math.exp %57 : vector<2x8x8xf32>
    %cst_28 = arith.constant dense<0.000000e+00> : vector<2x8xf32>
    %59 = vector.multi_reduction <add>, %58, %cst_28 [2] : vector<2x8x8xf32> to vector<2x8xf32>
    %60 = vector.shape_cast %59 : vector<2x8xf32> to vector<2x8x1xf32>
    %61 = tpu.reciprocal %60 {approx = true} : vector<2x8x1xf32> -> vector<2x8x1xf32>
    %62 = vector.broadcast %61 : vector<2x8x1xf32> to vector<2x8x8xf32>
    %63 = arith.mulf %58, %62 : vector<2x8x8xf32>
    %64 = arith.addf %50, %63 : vector<2x8x8xf32>
    %65 = vector.extract_strided_slice %46 {offsets = [0, 0, 0], sizes = [2, 8, 8], strides = [1, 1, 1]} : vector<2x8x32xf32> to vector<2x8x8xf32>
    "tpu.trace_start"() <{level = 10 : i32, message = "blm,bmd->bld"}> : () -> ()
    %cst_29 = arith.constant dense<0.000000e+00> : vector<2x8x8xf32>
    %66 = tpu.matmul %63, %65, %cst_29 {dimension_numbers = #tpu.dot_dimension_numbers<[2], [1], [1], [2], [0, 0, 0, 1, 1, 2], [0], [0]>} : vector<2x8x8xf32>, vector<2x8x8xf32>, vector<2x8x8xf32> -> vector<2x8x8xf32>
    "tpu.trace_stop"() : () -> ()
    %67 = vector.shape_cast %66 : vector<2x8x8xf32> to vector<16x8xf32>
    %68 = arith.truncf %67 : vector<16x8xf32> to vector<16x8xbf16>
    %69 = vector.extract_strided_slice %48 {offsets = [0, 0], sizes = [8, 32], strides = [1, 1]} : vector<32x32xbf16> to vector<8x32xbf16>
    %cst_30 = arith.constant dense<0.000000e+00> : vector<16x32xf32>
    %70 = tpu.matmul %68, %69, %cst_30 {dimension_numbers = #tpu.dot_dimension_numbers<[1], [0], [0], [1], [0, 0, 1, 1], [], []>} : vector<16x8xbf16>, vector<8x32xbf16>, vector<16x32xf32> -> vector<16x32xf32>
    %71 = arith.addf %49, %70 : vector<16x32xf32>
    %72 = vector.extract_strided_slice %42 {offsets = [0, 0, 8], sizes = [2, 8, 8], strides = [1, 1, 1]} : vector<2x8x32xf32> to vector<2x8x8xf32>
    %73 = vector.extract_strided_slice %44 {offsets = [0, 0, 8], sizes = [2, 8, 8], strides = [1, 1, 1]} : vector<2x8x32xf32> to vector<2x8x8xf32>
    "tpu.trace_start"() <{level = 10 : i32, message = "bld,bmd->blm"}> : () -> ()
    %cst_31 = arith.constant dense<0.000000e+00> : vector<2x8x8xf32>
    %74 = tpu.matmul %72, %73, %cst_31 {dimension_numbers = #tpu.dot_dimension_numbers<[2], [2], [1], [1], [0, 0, 0, 1, 1, 1], [0], [0]>} : vector<2x8x8xf32>, vector<2x8x8xf32>, vector<2x8x8xf32> -> vector<2x8x8xf32>
    "tpu.trace_stop"() : () -> ()
    %cst_32 = arith.constant dense<0xFF800000> : vector<2x8xf32>
    %75 = vector.multi_reduction <maximumf>, %74, %cst_32 [2] : vector<2x8x8xf32> to vector<2x8xf32>
    %76 = vector.shape_cast %75 : vector<2x8xf32> to vector<2x8x1xf32>
    %77 = vector.broadcast %76 : vector<2x8x1xf32> to vector<2x8x8xf32>
    %78 = arith.subf %74, %77 : vector<2x8x8xf32>
    %79 = math.exp %78 : vector<2x8x8xf32>
    %cst_33 = arith.constant dense<0.000000e+00> : vector<2x8xf32>
    %80 = vector.multi_reduction <add>, %79, %cst_33 [2] : vector<2x8x8xf32> to vector<2x8xf32>
    %81 = vector.shape_cast %80 : vector<2x8xf32> to vector<2x8x1xf32>
    %82 = tpu.reciprocal %81 {approx = true} : vector<2x8x1xf32> -> vector<2x8x1xf32>
    %83 = vector.broadcast %82 : vector<2x8x1xf32> to vector<2x8x8xf32>
    %84 = arith.mulf %79, %83 : vector<2x8x8xf32>
    %85 = arith.addf %64, %84 : vector<2x8x8xf32>
    %86 = vector.extract_strided_slice %46 {offsets = [0, 0, 8], sizes = [2, 8, 8], strides = [1, 1, 1]} : vector<2x8x32xf32> to vector<2x8x8xf32>
    "tpu.trace_start"() <{level = 10 : i32, message = "blm,bmd->bld"}> : () -> ()
    %cst_34 = arith.constant dense<0.000000e+00> : vector<2x8x8xf32>
    %87 = tpu.matmul %84, %86, %cst_34 {dimension_numbers = #tpu.dot_dimension_numbers<[2], [1], [1], [2], [0, 0, 0, 1, 1, 2], [0], [0]>} : vector<2x8x8xf32>, vector<2x8x8xf32>, vector<2x8x8xf32> -> vector<2x8x8xf32>
    "tpu.trace_stop"() : () -> ()
    %88 = vector.shape_cast %87 : vector<2x8x8xf32> to vector<16x8xf32>
    %89 = arith.truncf %88 : vector<16x8xf32> to vector<16x8xbf16>
    %90 = vector.extract_strided_slice %48 {offsets = [8, 0], sizes = [8, 32], strides = [1, 1]} : vector<32x32xbf16> to vector<8x32xbf16>
    %cst_35 = arith.constant dense<0.000000e+00> : vector<16x32xf32>
    %91 = tpu.matmul %89, %90, %cst_35 {dimension_numbers = #tpu.dot_dimension_numbers<[1], [0], [0], [1], [0, 0, 1, 1], [], []>} : vector<16x8xbf16>, vector<8x32xbf16>, vector<16x32xf32> -> vector<16x32xf32>
    %92 = arith.addf %71, %91 : vector<16x32xf32>
    %93 = vector.extract_strided_slice %42 {offsets = [0, 0, 16], sizes = [2, 8, 8], strides = [1, 1, 1]} : vector<2x8x32xf32> to vector<2x8x8xf32>
    %94 = vector.extract_strided_slice %44 {offsets = [0, 0, 16], sizes = [2, 8, 8], strides = [1, 1, 1]} : vector<2x8x32xf32> to vector<2x8x8xf32>
    "tpu.trace_start"() <{level = 10 : i32, message = "bld,bmd->blm"}> : () -> ()
    %cst_36 = arith.constant dense<0.000000e+00> : vector<2x8x8xf32>
    %95 = tpu.matmul %93, %94, %cst_36 {dimension_numbers = #tpu.dot_dimension_numbers<[2], [2], [1], [1], [0, 0, 0, 1, 1, 1], [0], [0]>} : vector<2x8x8xf32>, vector<2x8x8xf32>, vector<2x8x8xf32> -> vector<2x8x8xf32>
    "tpu.trace_stop"() : () -> ()
    %cst_37 = arith.constant dense<0xFF800000> : vector<2x8xf32>
    %96 = vector.multi_reduction <maximumf>, %95, %cst_37 [2] : vector<2x8x8xf32> to vector<2x8xf32>
    %97 = vector.shape_cast %96 : vector<2x8xf32> to vector<2x8x1xf32>
    %98 = vector.broadcast %97 : vector<2x8x1xf32> to vector<2x8x8xf32>
    %99 = arith.subf %95, %98 : vector<2x8x8xf32>
    %100 = math.exp %99 : vector<2x8x8xf32>
    %cst_38 = arith.constant dense<0.000000e+00> : vector<2x8xf32>
    %101 = vector.multi_reduction <add>, %100, %cst_38 [2] : vector<2x8x8xf32> to vector<2x8xf32>
    %102 = vector.shape_cast %101 : vector<2x8xf32> to vector<2x8x1xf32>
    %103 = tpu.reciprocal %102 {approx = true} : vector<2x8x1xf32> -> vector<2x8x1xf32>
    %104 = vector.broadcast %103 : vector<2x8x1xf32> to vector<2x8x8xf32>
    %105 = arith.mulf %100, %104 : vector<2x8x8xf32>
    %106 = arith.addf %85, %105 : vector<2x8x8xf32>
    %107 = vector.extract_strided_slice %46 {offsets = [0, 0, 16], sizes = [2, 8, 8], strides = [1, 1, 1]} : vector<2x8x32xf32> to vector<2x8x8xf32>
    "tpu.trace_start"() <{level = 10 : i32, message = "blm,bmd->bld"}> : () -> ()
    %cst_39 = arith.constant dense<0.000000e+00> : vector<2x8x8xf32>
    %108 = tpu.matmul %105, %107, %cst_39 {dimension_numbers = #tpu.dot_dimension_numbers<[2], [1], [1], [2], [0, 0, 0, 1, 1, 2], [0], [0]>} : vector<2x8x8xf32>, vector<2x8x8xf32>, vector<2x8x8xf32> -> vector<2x8x8xf32>
    "tpu.trace_stop"() : () -> ()
    %109 = vector.shape_cast %108 : vector<2x8x8xf32> to vector<16x8xf32>
    %110 = arith.truncf %109 : vector<16x8xf32> to vector<16x8xbf16>
    %111 = vector.extract_strided_slice %48 {offsets = [16, 0], sizes = [8, 32], strides = [1, 1]} : vector<32x32xbf16> to vector<8x32xbf16>
    %cst_40 = arith.constant dense<0.000000e+00> : vector<16x32xf32>
    %112 = tpu.matmul %110, %111, %cst_40 {dimension_numbers = #tpu.dot_dimension_numbers<[1], [0], [0], [1], [0, 0, 1, 1], [], []>} : vector<16x8xbf16>, vector<8x32xbf16>, vector<16x32xf32> -> vector<16x32xf32>
    %113 = arith.addf %92, %112 : vector<16x32xf32>
    %114 = vector.extract_strided_slice %42 {offsets = [0, 0, 24], sizes = [2, 8, 8], strides = [1, 1, 1]} : vector<2x8x32xf32> to vector<2x8x8xf32>
    %115 = vector.extract_strided_slice %44 {offsets = [0, 0, 24], sizes = [2, 8, 8], strides = [1, 1, 1]} : vector<2x8x32xf32> to vector<2x8x8xf32>
    "tpu.trace_start"() <{level = 10 : i32, message = "bld,bmd->blm"}> : () -> ()
    %cst_41 = arith.constant dense<0.000000e+00> : vector<2x8x8xf32>
    %116 = tpu.matmul %114, %115, %cst_41 {dimension_numbers = #tpu.dot_dimension_numbers<[2], [2], [1], [1], [0, 0, 0, 1, 1, 1], [0], [0]>} : vector<2x8x8xf32>, vector<2x8x8xf32>, vector<2x8x8xf32> -> vector<2x8x8xf32>
    "tpu.trace_stop"() : () -> ()
    %cst_42 = arith.constant dense<0xFF800000> : vector<2x8xf32>
    %117 = vector.multi_reduction <maximumf>, %116, %cst_42 [2] : vector<2x8x8xf32> to vector<2x8xf32>
    %118 = vector.shape_cast %117 : vector<2x8xf32> to vector<2x8x1xf32>
    %119 = vector.broadcast %118 : vector<2x8x1xf32> to vector<2x8x8xf32>
    %120 = arith.subf %116, %119 : vector<2x8x8xf32>
    %121 = math.exp %120 : vector<2x8x8xf32>
    %cst_43 = arith.constant dense<0.000000e+00> : vector<2x8xf32>
    %122 = vector.multi_reduction <add>, %121, %cst_43 [2] : vector<2x8x8xf32> to vector<2x8xf32>
    %123 = vector.shape_cast %122 : vector<2x8xf32> to vector<2x8x1xf32>
    %124 = tpu.reciprocal %123 {approx = true} : vector<2x8x1xf32> -> vector<2x8x1xf32>
    %125 = vector.broadcast %124 : vector<2x8x1xf32> to vector<2x8x8xf32>
    %126 = arith.mulf %121, %125 : vector<2x8x8xf32>
    %127 = arith.addf %106, %126 : vector<2x8x8xf32>
    %128 = vector.extract_strided_slice %46 {offsets = [0, 0, 24], sizes = [2, 8, 8], strides = [1, 1, 1]} : vector<2x8x32xf32> to vector<2x8x8xf32>
    "tpu.trace_start"() <{level = 10 : i32, message = "blm,bmd->bld"}> : () -> ()
    %cst_44 = arith.constant dense<0.000000e+00> : vector<2x8x8xf32>
    %129 = tpu.matmul %126, %128, %cst_44 {dimension_numbers = #tpu.dot_dimension_numbers<[2], [1], [1], [2], [0, 0, 0, 1, 1, 2], [0], [0]>} : vector<2x8x8xf32>, vector<2x8x8xf32>, vector<2x8x8xf32> -> vector<2x8x8xf32>
    "tpu.trace_stop"() : () -> ()
    %130 = vector.shape_cast %129 : vector<2x8x8xf32> to vector<16x8xf32>
    %131 = arith.truncf %130 : vector<16x8xf32> to vector<16x8xbf16>
    %132 = vector.extract_strided_slice %48 {offsets = [24, 0], sizes = [8, 32], strides = [1, 1]} : vector<32x32xbf16> to vector<8x32xbf16>
    %cst_45 = arith.constant dense<0.000000e+00> : vector<16x32xf32>
    %133 = tpu.matmul %131, %132, %cst_45 {dimension_numbers = #tpu.dot_dimension_numbers<[1], [0], [0], [1], [0, 0, 1, 1], [], []>} : vector<16x8xbf16>, vector<8x32xbf16>, vector<16x32xf32> -> vector<16x32xf32>
    %134 = arith.addf %113, %133 : vector<16x32xf32>
    %135 = arith.addf %4, %134 : vector<16x32xf32>
    %c0_46 = arith.constant 0 : index
    %c0_47 = arith.constant 0 : index
    %c0_48 = arith.constant 0 : index
    %136 = vector.load %arg8[%c0_46, %c0_47, %c0_48] : memref<1x1x32xf32, #tpu.memory_space<vmem>>, vector<1x1x32xf32>
    %137 = vector.shape_cast %136 : vector<1x1x32xf32> to vector<1x32xf32>
    %138 = vector.broadcast %137 : vector<1x32xf32> to vector<16x32xf32>
    %139 = arith.addf %135, %138 : vector<16x32xf32>
    %c0_49 = arith.constant 0 : index
    %c0_50 = arith.constant 0 : index
    %c0_51 = arith.constant 0 : index
    %140 = vector.load %arg9[%c0_49, %c0_50, %c0_51] : memref<1x1x32xf32, #tpu.memory_space<vmem>>, vector<1x1x32xf32>
    %141 = vector.shape_cast %140 : vector<1x1x32xf32> to vector<1x32xf32>
    %c0_52 = arith.constant 0 : index
    %c0_53 = arith.constant 0 : index
    %c0_54 = arith.constant 0 : index
    %142 = vector.load %arg10[%c0_52, %c0_53, %c0_54] : memref<1x1x32xf32, #tpu.memory_space<vmem>>, vector<1x1x32xf32>
    %143 = vector.shape_cast %142 : vector<1x1x32xf32> to vector<1x32xf32>
    %cst_55 = arith.constant dense<0.000000e+00> : vector<16xf32>
    %144 = vector.multi_reduction <add>, %139, %cst_55 [1] : vector<16x32xf32> to vector<16xf32>
    %145 = vector.shape_cast %144 : vector<16xf32> to vector<16x1xf32>
    %cst_56 = arith.constant 3.200000e+01 : f32
    %146 = vector.broadcast %cst_56 : f32 to vector<16x1xf32>
    %147 = arith.divf %145, %146 : vector<16x1xf32>
    %148 = vector.broadcast %147 : vector<16x1xf32> to vector<16x32xf32>
    %149 = arith.subf %139, %148 : vector<16x32xf32>
    %150 = arith.mulf %149, %149 : vector<16x32xf32>
    %cst_57 = arith.constant dense<0.000000e+00> : vector<16xf32>
    %151 = vector.multi_reduction <add>, %150, %cst_57 [1] : vector<16x32xf32> to vector<16xf32>
    %152 = vector.shape_cast %151 : vector<16xf32> to vector<16x1xf32>
    %cst_58 = arith.constant 3.200000e+01 : f32
    %153 = vector.broadcast %cst_58 : f32 to vector<16x1xf32>
    %154 = arith.divf %152, %153 : vector<16x1xf32>
    %155 = vector.broadcast %147 : vector<16x1xf32> to vector<16x32xf32>
    %156 = arith.subf %139, %155 : vector<16x32xf32>
    %cst_59 = arith.constant 9.99999974E-6 : f32
    %157 = vector.broadcast %cst_59 : f32 to vector<16x1xf32>
    %158 = arith.addf %154, %157 : vector<16x1xf32>
    %159 = math.rsqrt %158 : vector<16x1xf32>
    %160 = vector.broadcast %159 : vector<16x1xf32> to vector<16x32xf32>
    %161 = arith.mulf %156, %160 : vector<16x32xf32>
    %162 = vector.broadcast %141 : vector<1x32xf32> to vector<16x32xf32>
    %163 = arith.mulf %161, %162 : vector<16x32xf32>
    %164 = vector.broadcast %143 : vector<1x32xf32> to vector<16x32xf32>
    %165 = arith.addf %163, %164 : vector<16x32xf32>
    %166 = arith.truncf %165 : vector<16x32xf32> to vector<16x32xbf16>
    %c0_60 = arith.constant 0 : index
    %c0_61 = arith.constant 0 : index
    %c0_62 = arith.constant 0 : index
    %167 = vector.load %arg11[%c0_60, %c0_61, %c0_62] : memref<1x32x128xbf16, #tpu.memory_space<vmem>>, vector<1x32x128xbf16>
    %168 = vector.shape_cast %167 : vector<1x32x128xbf16> to vector<32x128xbf16>
    %cst_63 = arith.constant dense<0.000000e+00> : vector<16x128xf32>
    %169 = tpu.matmul %166, %168, %cst_63 {dimension_numbers = #tpu.dot_dimension_numbers<[1], [0], [0], [1], [0, 0, 1, 1], [], []>} : vector<16x32xbf16>, vector<32x128xbf16>, vector<16x128xf32> -> vector<16x128xf32>
    %c0_64 = arith.constant 0 : index
    %c0_65 = arith.constant 0 : index
    %c0_66 = arith.constant 0 : index
    %170 = vector.load %arg12[%c0_64, %c0_65, %c0_66] : memref<1x1x128xf32, #tpu.memory_space<vmem>>, vector<1x1x128xf32>
    %171 = vector.shape_cast %170 : vector<1x1x128xf32> to vector<1x128xf32>
    %172 = vector.broadcast %171 : vector<1x128xf32> to vector<16x128xf32>
    %173 = arith.addf %169, %172 : vector<16x128xf32>
    %cst_67 = arith.constant 1.702000e+00 : f32
    %174 = vector.broadcast %cst_67 : f32 to vector<16x128xf32>
    %175 = arith.mulf %174, %173 : vector<16x128xf32>
    %176 = arith.negf %175 : vector<16x128xf32>
    %177 = math.exp %176 : vector<16x128xf32>
    %cst_68 = arith.constant 1.000000e+00 : f32
    %178 = vector.broadcast %cst_68 : f32 to vector<16x128xf32>
    %179 = arith.addf %178, %177 : vector<16x128xf32>
    %180 = arith.divf %178, %179 : vector<16x128xf32>
    %181 = arith.mulf %173, %180 : vector<16x128xf32>
    %182 = arith.truncf %181 : vector<16x128xf32> to vector<16x128xbf16>
    %c0_69 = arith.constant 0 : index
    %c0_70 = arith.constant 0 : index
    %c0_71 = arith.constant 0 : index
    %183 = vector.load %arg13[%c0_69, %c0_70, %c0_71] : memref<1x128x32xbf16, #tpu.memory_space<vmem>>, vector<1x128x32xbf16>
    %184 = vector.shape_cast %183 : vector<1x128x32xbf16> to vector<128x32xbf16>
    %cst_72 = arith.constant dense<0.000000e+00> : vector<16x32xf32>
    %185 = tpu.matmul %182, %184, %cst_72 {dimension_numbers = #tpu.dot_dimension_numbers<[1], [0], [0], [1], [0, 0, 1, 1], [], []>} : vector<16x128xbf16>, vector<128x32xbf16>, vector<16x32xf32> -> vector<16x32xf32>
    %c0_73 = arith.constant 0 : index
    %c0_74 = arith.constant 0 : index
    %c0_75 = arith.constant 0 : index
    %186 = vector.load %arg14[%c0_73, %c0_74, %c0_75] : memref<1x1x32xf32, #tpu.memory_space<vmem>>, vector<1x1x32xf32>
    %187 = vector.shape_cast %186 : vector<1x1x32xf32> to vector<1x32xf32>
    %188 = vector.broadcast %187 : vector<1x32xf32> to vector<16x32xf32>
    %189 = arith.addf %185, %188 : vector<16x32xf32>
    %190 = arith.addf %139, %189 : vector<16x32xf32>
    %191 = vector.shape_cast %190 : vector<16x32xf32> to vector<2x8x32xf32>
    %c0_76 = arith.constant 0 : index
    %c0_77 = arith.constant 0 : index
    %c0_78 = arith.constant 0 : index
    %192 = vector.load %arg15[%c0_76, %c0_77, %c0_78] : memref<2x8x32xf32, #tpu.memory_space<vmem>>, vector<2x8x32xf32>
    tpu.vector_store %arg15[%c0_76, %c0_77, %c0_78], %191 {strides = array<i32>} : memref<2x8x32xf32, #tpu.memory_space<vmem>>, vector<2x8x32xf32>,
    %cst_79 = arith.constant 2.500000e-01 : f32
    %193 = vector.broadcast %cst_79 : f32 to vector<2x8x8xf32>
    %194 = arith.mulf %127, %193 : vector<2x8x8xf32>
    %195 = vector.shape_cast %194 : vector<2x8x8xf32> to vector<2x1x8x8xf32>
    %c0_80 = arith.constant 0 : index
    %c0_81 = arith.constant 0 : index
    %c0_82 = arith.constant 0 : index
    %c0_83 = arith.constant 0 : index
    %196 = vector.load %arg16[%c0_80, %c0_81, %c0_82, %c0_83] : memref<2x1x8x8xf32, #tpu.memory_space<vmem>>, vector<2x1x8x8xf32>
    tpu.vector_store %arg16[%c0_80, %c0_81, %c0_82, %c0_83], %195 {strides = array<i32>} : memref<2x1x8x8xf32, #tpu.memory_space<vmem>>, vector<2x1x8x8xf32>,
    return
  }
  func.func @transform_0(%arg0: i32, %arg1: i32) -> (i32, i32, i32) {
    %c0_i32 = arith.constant 0 : i32
    %c0_i32_0 = arith.constant 0 : i32
    %c0_i32_1 = arith.constant 0 : i32
    return %arg0, %c0_i32, %c0_i32_0 : i32, i32, i32
  }
  func.func @transform_1(%arg0: i32, %arg1: i32) -> (i32, i32, i32) {
    %c0_i32 = arith.constant 0 : i32
    %c0_i32_0 = arith.constant 0 : i32
    %c0_i32_1 = arith.constant 0 : i32
    return %arg1, %c0_i32, %c0_i32_0 : i32, i32, i32
  }
  func.func @transform_2(%arg0: i32, %arg1: i32) -> (i32, i32, i32) {
    %c0_i32 = arith.constant 0 : i32
    %c0_i32_0 = arith.constant 0 : i32
    %c0_i32_1 = arith.constant 0 : i32
    return %arg1, %c0_i32, %c0_i32_0 : i32, i32, i32
  }
  func.func @transform_3(%arg0: i32, %arg1: i32) -> (i32, i32, i32) {
    %c0_i32 = arith.constant 0 : i32
    %c0_i32_0 = arith.constant 0 : i32
    %c0_i32_1 = arith.constant 0 : i32
    return %arg1, %c0_i32, %c0_i32_0 : i32, i32, i32
  }
  func.func @transform_4(%arg0: i32, %arg1: i32) -> (i32, i32, i32) {
    %c0_i32 = arith.constant 0 : i32
    %c0_i32_0 = arith.constant 0 : i32
    %c0_i32_1 = arith.constant 0 : i32
    return %arg1, %c0_i32, %c0_i32_0 : i32, i32, i32
  }
  func.func @transform_5(%arg0: i32, %arg1: i32) -> (i32, i32, i32) {
    %c0_i32 = arith.constant 0 : i32
    %c0_i32_0 = arith.constant 0 : i32
    %c0_i32_1 = arith.constant 0 : i32
    return %arg1, %c0_i32, %c0_i32_0 : i32, i32, i32
  }
  func.func @transform_6(%arg0: i32, %arg1: i32) -> (i32, i32, i32) {
    %c0_i32 = arith.constant 0 : i32
    %c0_i32_0 = arith.constant 0 : i32
    %c0_i32_1 = arith.constant 0 : i32
    return %arg1, %c0_i32, %c0_i32_0 : i32, i32, i32
  }
  func.func @transform_7(%arg0: i32, %arg1: i32) -> (i32, i32, i32) {
    %c0_i32 = arith.constant 0 : i32
    %c0_i32_0 = arith.constant 0 : i32
    %c0_i32_1 = arith.constant 0 : i32
    return %arg1, %c0_i32, %c0_i32_0 : i32, i32, i32
  }
  func.func @transform_8(%arg0: i32, %arg1: i32) -> (i32, i32, i32) {
    %c0_i32 = arith.constant 0 : i32
    %c0_i32_0 = arith.constant 0 : i32
    %c0_i32_1 = arith.constant 0 : i32
    return %arg1, %c0_i32, %c0_i32_0 : i32, i32, i32
  }
  func.func @transform_9(%arg0: i32, %arg1: i32) -> (i32, i32, i32) {
    %c0_i32 = arith.constant 0 : i32
    %c0_i32_0 = arith.constant 0 : i32
    %c0_i32_1 = arith.constant 0 : i32
    return %arg1, %c0_i32, %c0_i32_0 : i32, i32, i32
  }
  func.func @transform_10(%arg0: i32, %arg1: i32) -> (i32, i32, i32) {
    %c0_i32 = arith.constant 0 : i32
    %c0_i32_0 = arith.constant 0 : i32
    %c0_i32_1 = arith.constant 0 : i32
    return %arg1, %c0_i32, %c0_i32_0 : i32, i32, i32
  }
  func.func @transform_11(%arg0: i32, %arg1: i32) -> (i32, i32, i32) {
    %c0_i32 = arith.constant 0 : i32
    %c0_i32_0 = arith.constant 0 : i32
    %c0_i32_1 = arith.constant 0 : i32
    return %arg1, %c0_i32, %c0_i32_0 : i32, i32, i32
  }
  func.func @transform_12(%arg0: i32, %arg1: i32) -> (i32, i32, i32) {
    %c0_i32 = arith.constant 0 : i32
    %c0_i32_0 = arith.constant 0 : i32
    %c0_i32_1 = arith.constant 0 : i32
    return %arg1, %c0_i32, %c0_i32_0 : i32, i32, i32
  }
  func.func @transform_13(%arg0: i32, %arg1: i32) -> (i32, i32, i32) {
    %c0_i32 = arith.constant 0 : i32
    %c0_i32_0 = arith.constant 0 : i32
    %c0_i32_1 = arith.constant 0 : i32
    return %arg0, %c0_i32, %c0_i32_0 : i32, i32, i32
  }
  func.func @transform_14(%arg0: i32, %arg1: i32) -> (i32, i32, i32, i32) {
    %c0_i32 = arith.constant 0 : i32
    %c0_i32_0 = arith.constant 0 : i32
    %c0_i32_1 = arith.constant 0 : i32
    return %arg0, %arg1, %c0_i32, %c0_i32_0 : i32, i32, i32, i32
  }
}

</mosaic_0001>

<bundles_post_ra>
// kernel: tpu_custom_call.1
= control target key start
LH: loop header
LB: loop body
LE: loop exit
PB: predicated region body
PF: predicated region fallthrough
CT: control target
= control target key end

     0   :  { %s3965_s0 = inlined_call_operand.vmem [shape: f32[2,8,32], index: 0, kind: input, shape index: {}]   ;;  %s3966_s1 = inlined_call_operand.vmem [shape: f32[2,1,32], index: 1, kind: input, shape index: {}]   ;;  %s3967_s2 = inlined_call_operand.vmem [shape: f32[2,1,32], index: 2, kind: input, shape index: {}]   ;;  %s3968_s3 = inlined_call_operand.vmem [shape: bf16[2,32,96], index: 3, kind: input, shape index: {}]   ;;  %s3969_s4 = inlined_call_operand.vmem [shape: f32[2,1,96], index: 4, kind: input, shape index: {}]   ;;  %s3970_s5 = inlined_call_operand.vmem [shape: bf16[2,32,32], index: 5, kind: input, shape index: {}]   ;;  %s3971_s6 = inlined_call_operand.vmem [shape: f32[2,1,32], index: 6, kind: input, shape index: {}]   ;;  %s3972_s7 = inlined_call_operand.vmem [shape: f32[2,1,32], index: 7, kind: input, shape index: {}]   ;;  %s3973_s8 = inlined_call_operand.vmem [shape: f32[2,1,32], index: 8, kind: input, shape index: {}]   ;;  %s3974_s9 = inlined_call_operand.vmem [shape: bf16[2,32,128], index: 9, kind: input, shape index: {}]   ;;  %s3975_s10 = inlined_call_operand.vmem [shape: f32[2,1,128], index: 10, kind: input, shape index: {}]   ;;  %s3976_s11 = inlined_call_operand.vmem [shape: bf16[2,128,32], index: 11, kind: input, shape index: {}]   ;;  %s3977_s12 = inlined_call_operand.vmem [shape: f32[2,1,32], index: 12, kind: input, shape index: {}]   ;;  %s3978_s13 = inlined_call_operand.hbm [shape: f32[2,8,32], index: 13, kind: output, shape index: {0}]   ;;  %s3979_s14 = inlined_call_operand.hbm [shape: f32[2,2,8,8], index: 14, kind: output, shape index: {1}]  }
   0x1   :  { %3996 = sst [smem:[#allocation19_spill]] %s3967_s2 }
   0x2   :  { %3997 = sst [smem:[#allocation20_spill]] %s3968_s3 }
   0x3   :  { %3998 = sst [smem:[#allocation21_spill]] %s3970_s5 }
   0x4   :  { %3999 = sst [smem:[#allocation22_spill]] %s3978_s13 }
   0x5   :  { %4000 = sst [smem:[#allocation23_spill]] %s3979_s14 }
   0x6   :  { %20 = vsyncpa [#allocation3], 0 }
   0x7   :  { %21 = vsyncpa [#allocation5], 0 }
   0x8   :  { %23 = vsyncpa [#allocation5 + $0x1], 0  ;;  %s3454_s29 = smov 0   ;;  %s3456_s30 = smov 0  }
   0x9   :  { %s3458_s15 = smov 0   ;;  %s3460_s16 = smov 0  }
   0xa   :  { %s3462_s17 = smov 0   ;;  %s3464_s18 = smov 0  }
   0xb LB: > { %4001 = sst [smem:[#allocation8_spill]] %s3339_s29  ;;  %s2840_s19 = sadd.s32 4294967295, %s3359_s18   ;;  %s3359_s18 = sphi %s3464_s18, %s29_s18   ;;  %s3355_s17 = sphi %s3462_s17, %s4038_s17   ;;  %s3351_s16 = sphi %s3460_s16, %s4037_s16   ;;  %s3347_s15 = sphi %s3458_s15, %s4036_s15   ;;  %s3343_s30 = sphi %s3456_s30, %s4035_s30   ;;  %s3339_s29 = sphi %s3454_s29, %s4034_s29  }
   0xc   : > { %4002 = sst [smem:[#allocation9_spill]] %s3343_s30  ;;  %s2841_s20 = sadd.s32 4294967294, %s3359_s18  }
   0xd   : > { %4003 = sst [smem:[#allocation10_spill]] %s3347_s15  ;;  %s38_s21 = sadd.s32 1, %s3355_s17 }
   0xe   : > { %4004 = sst [smem:[#allocation11_spill]] %s3355_s17  ;;  %s414_s22 = sadd.s32 1, %s3347_s15 }
   0xf   : > { %4005 = sst [smem:[#allocation12_spill]] %s3359_s18  ;;  %p39_p0 = scmp.ge.s32.totalorder %s38_s21, 2 }
  0x10   : > { %p424_p1 = scmp.ne.s32.totalorder %s3347_s15, %s3343_s30  ;;  %p3490_p2 = scmp.eq.s32.totalorder %s2840_s19, 1 }
  0x11   : > { %p430_p3 = scmp.ne.s32.totalorder %s3343_s30, %s3339_s29  ;;  %s4040_s21 = smov (%p39_p0, %s38_s21), 0 }
  0x12   : > { %s4006_s23 = scalar_select %p3490_p2, 1, 0 }
  0x13   : > { %4008 = sst [smem:[#allocation14_spill]] %s4040_s21  ;;  %p3500_p4 = por %p3490_p2, %p424_p1 }
  0x14   : > { %4007 = sst [smem:[#allocation13_spill]] %s4006_s23  ;;  %p431_p5 = scmp.eq.s32.totalorder %s2841_s20, 1 }
  0x15   : > { %s4009_s24 = scalar_select %p3500_p4, 1, 0 }
  0x16   : > { %s410_s25 = ssub.s32 %s3355_s17, %s4040_s21  ;;  %p2845_p6 = scmp.ge.s32.totalorder %s3359_s18, 1 }
  0x17   : > { %4010 = sst [smem:[#allocation15_spill]] %s4009_s24  ;;  %p412_p7 = scmp.eq.s32.totalorder %s410_s25, 0 }
  0x18   : > { %p3507_p8 = por %p431_p5, %p430_p3  ;;  %p538_p9 = scmp.lt.s32.totalorder %s3359_s18, 3 }
  0x19   : > { %s3513_s27 = scalar_select %p412_p7, %s3347_s15, %s414_s22  }
  0x1a   : > { %s4011_s26 = scalar_select %p3507_p8, 1, 0 }
  0x1b   : > { %4013 = sst [smem:[#allocation17_spill]] %s3513_s27  ;;  %p539_p10 = pnand %p2845_p6, %p538_p9 }
  0x1c   : > { %4012 = sst [smem:[#allocation16_spill]] %s4011_s26 }
  0x1d   : > { %542 = sbr.rel (%p539_p10) target bundleno = 4291 (0x10c3), region = 72 }
  0x24   : > { %s3982_s28 = sand.u32 1, %s3343_s30   ;;  %p634_p11 = scmp.lt.s32.totalorder %s3351_s16, 1 }
  0x25   : > { %s2846_s19 = sshll.u32 %s3982_s28, 4  ;;  %s4015_s3 = sld [smem:[#allocation20_spill]] }
  0x26   : > { %s3520_s20 = scalar_select %p634_p11, %s3351_s16, 1 }
  0x27   : > { %s4016_s5 = sld [smem:[#allocation21_spill]]  ;;  %s3576_s26 = scalar_lea.vmem [#allocation4], %s2846_s19 }
  0x28   : > { %s2914_s15 = sshll.u32 %s3520_s20, 4  ;;  %s658_s2 = scalar_lea.vmem %s3972_s7, %s3520_s20 }
  0x29   : > { %s661_s18 = scalar_lea.vmem %s3973_s8, %s3520_s20  ;;  %s677_s29 = scalar_lea.vmem %s3977_s12, %s3520_s20 }
  0x2a   : > { %p2855_p12 = scmp.ne.s32.totalorder %s3351_s16, 0 }
  0x2b   : > { %s3538_s13 = scalar_lea.vmem %s4015_s3, %s2914_s15  ;;  %s3560_s3 = scalar_lea.vmem %s3974_s9, %s2914_s15  ;;  %v685_v0 = vld [vmem:[%s3965_s0] sm:$0xff] (!%p2855_p12)  ;;  %vm687_vm0 = vcmask (!%p2855_p12), 261120   ;;  %v686_v1 = vld [vmem:[%s3965_s0 + $0x8] sm:$0xff] (!%p2855_p12) }
  0x2c   : > { %684 = sbr.rel (%p2855_p12) target bundleno = 51 (0x33), region = 76  ;;  %688 = vst.msk [vmem:[#allocation2] sm:$0xff] (!%p2855_p12), %vm687_vm0, %v685_v0  ;;  %689 = vst.msk [vmem:[#allocation2 + $0x8] sm:$0xff] (!%p2855_p12), %vm687_vm0, %v686_v1 }
  0x2d   : > { %s3543_s24 = scalar_lea.vmem %s4016_s5, %s2914_s15  ;;  %s669_s5 = scalar_lea.vmem %s3975_s10, %s3520_s20 }
  0x2e   : > { %4017 = sst [smem:[#allocation18_spill]] %s3543_s24  ;;  %s2917_s24 = sshll.u32 %s3520_s20, 6 }
  0x2f   : > { %s3570_s17 = scalar_lea.vmem %s3976_s11, %s2917_s24 }
  0x33 PF: > { %v3585_v2 = vld [vmem:[#allocation2] sm:$0xff]  ;;  %vm694_vm1 = vcmask 261120   ;;  %v3587_v3 = vld [vmem:[#allocation2 + $0x8] sm:$0xff]  ;;  %v3361_v17 = vmov 0.0   ;;  %vm3362_vm2 = vmmov 0   ;;  %s4018_s19 = scalar_lea.vmem %s3966_s1, %s3520_s20  ;;  %s4019_s22 = sld [smem:[#allocation19_spill]] }
  0x34   : > { %v695_v4 = vsel %vm694_vm1, %v3585_v2, 0.0  ;;  %v698_v5 = vsel %vm694_vm1, %v3587_v3, 0.0  ;;  %v3191_v16 = vld [vmem:[%s3538_s13] sm:$0xff]   ;;  %2973 = vmatprep.subr.bf16.mxu0 %v3361_v17  ;;  %2986 = vmatprep.subr.mxu1 %v3361_v17  ;;  %v3192_v18 = vld [vmem:[%s3538_s13 + $0x8] sm:$0xff]   ;;  %s4021_s21 = scalar_lea.vmem %s3969_s4, %s3520_s20  ;;  %s3363_s25 = smov 96   ;;  %vm815_vm3 = vcmask 64512  }
  0x35   : > { %696 = vadd.xlane.f32.xlu0 %v695_v4  ;;  %2974 = vmatpush3.bf16.msra.mxu0 %v3191_v16  ;;  %v2856_v27 = vld [vmem:[%s4018_s19] ss:$0 sm:$0xff]  ;;  %s3364_s14 = smov 64   ;;  %s3365_s13 = smov 88   ;;  %vm1482_vm4 = vcmask 1043456  }
  0x36   : > { %2977 = vmatprep.mubr.msk.bf16.mxu0 %vm3362_vm2, %v3361_v17  ;;  %2975 = vmatprep.subr.bf16.mxu0 %v3361_v17  ;;  %v2858_v36 = vld [vmem:[%s4021_s21] ss:$0 sm:$0xff]  ;;  %s3366_s24 = smov 120   ;;  %s3367_s19 = smov 56  }
  0x37   : > { %2988 = vmatprep.mubr.msk.f32.mxu1 %vm3362_vm2, %v3361_v17  ;;  %s3368_s23 = smov 80   ;;  %s3369_s30 = smov 112  }
  0x38   : > { %s3371_s27 = smov 48   ;;  %s3372_s15 = smov 104  }
  0x39   : > { %699 = vadd.xlane.f32.xlu0 %v698_v5  ;;  %2976 = vmatpush3.bf16.msra.mxu0 %v3192_v18  ;;  %s4020_s28 = scalar_lea.vmem %s4019_s22, %s3520_s20  ;;  %s3370_s22 = smov 72  }
  0x3a   : > { %2981 = vmatprep.subr.mxu0 %v3361_v17  ;;  %v2857_v31 = vld [vmem:[%s4020_s28] ss:$0 sm:$0xff]  ;;  %s4022_s28 = sld [smem:[#allocation18_spill]]  ;;  %s3373_s21 = smov 40  }
  0xc2   : > { %v697_v6 = vpop.xlane.xlu0 %696 }
  0xc3   : > { %v702_v7 = vmul.f32 0.03125, %v697_v6 }
  0xc5   : > { %v704_v8 = vsub.f32 %v3585_v2, %v702_v7 }
  0xc6   : > { %v700_v9 = vpop.xlane.xlu0 %699 }
  0xc7   : > { %v703_v10 = vmul.f32 0.03125, %v700_v9  ;;  %v706_v11 = vmul.f32 %v704_v8, %v704_v8 }
  0xc9   : > { %v705_v12 = vsub.f32 %v3587_v3, %v703_v10  ;;  %v708_v13 = vsel %vm694_vm1, %v706_v11, 0.0 }
  0xca   : > { %709 = vadd.xlane.f32.xlu1 %v708_v13 }
  0xcb   : > { %v707_v14 = vmul.f32 %v705_v12, %v705_v12 }
  0xcd   : > { %v711_v15 = vsel %vm694_vm1, %v707_v14, 0.0 }
  0xce   : > { %712 = vadd.xlane.f32.xlu1 %v711_v15 }
 0x157   : > { %v710_v19 = vpop.xlane.xlu1 %709 }
 0x158   : > { %v714_v20 = vmul.f32 0.03125, %v710_v19 }
 0x15a   : > { %v716_v21 = vadd.f32 1e-05, %v714_v20 }
 0x15b   : > { %v713_v22 = vpop.xlane.xlu1 %712 }
 0x15c   : > { %3203 = vrsqrt.f32 %v716_v21  ;;  %v715_v23 = vmul.f32 0.03125, %v713_v22 }
 0x15e   : > { %v717_v24 = vadd.f32 1e-05, %v715_v23 }
 0x160   : > { %3205 = vrsqrt.f32 %v717_v24 }
 0x166   : > { %v3204_v25 = vpop.eup %3203 }
 0x167   : > { %v720_v26 = vmul.f32 %v3204_v25, %v704_v8 }
 0x169   : > { %v728_v30 = vmul.f32 %v2856_v27, %v720_v26 }
 0x16a   : > { %v3206_v28 = vpop.eup %3205 }
 0x16b   : > { %v721_v29 = vmul.f32 %v3206_v28, %v705_v12  ;;  %v736_v33 = vadd.f32 %v2857_v31, %v728_v30 }
 0x16d   : > { %v729_v32 = vmul.f32 %v2856_v27, %v721_v29 }
 0x16f   : > { %v737_v34 = vadd.f32 %v2857_v31, %v729_v32 }
 0x171   : > { %v738_v35 = vpack.c.bf16 %v737_v34, %v736_v33 }
 0x173   : > { %2978 = vmatmul.mubr.msk.bf16.vlgmr.msra.gmra.mrb[0].mxu0 %vm694_vm1, %v738_v35 }
 0x174   : > { %2983 = vmatprep.mubr.msk.f32.mxu0 %vm3362_vm2, %v3361_v17 }
 0x246   : > { %v799_v37 = vpop.f32.mrb[0].mxu0 }
 0x247   : > { %v3625_v38 = vadd.f32 %v2858_v36, %v799_v37  ;;  %v2979_v39 = vpop.f32.mrb[1].mxu0 }
 0x248   : > { %v802_v40 = vpop.f32.mrb[2].mxu0 }
 0x249   : > { %v3627_v41 = vadd.f32 %v2858_v36, %v802_v40  ;;  %813 = vrot.lane.b32.xlu0 %v3625_v38, %s3363_s25  ;;  %v2980_v42 = vpop.f32.mrb[3].mxu0  ;;  %v3633_v45 = vmul.f32 0.35355338, %v3625_v38 }
 0x24b   : > { %892 = vrot.lane.b32.xlu1 %v3627_v41, %s3363_s25  ;;  %v3640_v46 = vmul.f32 0.35355338, %v3627_v41 }
 0x2bb   : > { %v814_v43 = vpop.permute.xlu0 %813 }
 0x2bc   : > { %2982 = vmatpush3.xpose.msk.msra.mxu0 %vm815_vm3, %v814_v43 }
 0x2bd   : > { %v893_v44 = vpop.permute.xlu1 %892  ;;  %2996 = vmatprep.subr.mxu0 %v3361_v17 }
 0x2be   : > { %2987 = vmatpush3.xpose.msk.msra.mxu1 %vm815_vm3, %v893_v44 }
 0x2bf   : > { %2984 = vmatmul.mubr.msk.f32.vlgmr.msra.gmra.mrb[4].mxu0 %vm815_vm3, %v3633_v45  ;;  %2991 = vmatprep.subr.mxu1 %v3361_v17 }
 0x2c0   : > { %2998 = vmatprep.mubr.msk.f32.mxu0 %vm3362_vm2, %v3361_v17 }
 0x2c1   : > { %2989 = vmatmul.mubr.msk.f32.vlgmr.msra.gmra.mrb[0].mxu1 %vm815_vm3, %v3640_v46 }
 0x2c2   : > { %2993 = vmatprep.mubr.msk.f32.mxu1 %vm3362_vm2, %v3361_v17 }
 0x392   : > { %v887_v47 = vpop.f32.mrb[4].mxu0 }
 0x393   : > { %v2985_v48 = vpop.f32.mrb[5].mxu0  ;;  %v969_v49 = vsel %vm815_vm3, %v887_v47, -inf }
 0x394   : > { %v965_v50 = vpop.f32.mrb[0].mxu1  ;;  %970 = vmax.xlane.f32.xlu1 %v969_v49 }
 0x395   : > { %v2990_v51 = vpop.f32.mrb[1].mxu1  ;;  %v972_v52 = vsel %vm815_vm3, %v965_v50, -inf }
 0x396   : > { %973 = vmax.xlane.f32.xlu0 %v972_v52  ;;  %v809_v51 = vld [vmem:[%s4022_s28 + $0x4] sm:$0xf] }
 0x397   : > { %v1484_v52 = vsel %vm1482_vm4, %v809_v51, 0 }
 0x3a5   : > { %1069 = vrot.lane.b32.xlu1 %v3627_v41, %s3364_s14 }
 0x3a9   : > { %1148 = vrot.lane.b32.xlu1 %v3625_v38, %s3365_s13 }
 0x3ac   : > { %993 = vrot.lane.b32.xlu0 %v3625_v38, %s3364_s14 }
 0x3ad   : > { %1226 = vrot.lane.b32.xlu1 %v3627_v41, %s3365_s13  ;;  %s4023_s13 = scalar_lea.vmem %s3971_s6, %s3520_s20 }
 0x421   : > { %v971_v53 = vpop.xlane.xlu1 %970 }
 0x422   : > { %v975_v54 = vsub.f32 %v887_v47, %v971_v53 }
 0x423   : > { %v974_v55 = vpop.xlane.xlu0 %973 }
 0x424   : > { %v977_v56 = vmul.f32 1.442695, %v975_v54  ;;  %v976_v57 = vsub.f32 %v965_v50, %v974_v55  ;;  %v808_v55 = vld [vmem:[%s4022_s28] sm:$0xf] }
 0x425   : > { %v1070_v58 = vpop.permute.xlu1 %1069 }
 0x426   : > { %3207 = vpow2.f32 %v977_v56  ;;  %v979_v59 = vmul.f32 1.442695, %v976_v57  ;;  %2997 = vmatpush3.msra.mxu0 %v1070_v58 }
 0x427   : > { %v994_v60 = vpop.permute.xlu0 %993  ;;  %3006 = vmatprep.subr.mxu0 %v3361_v17 }
 0x428   : > { %3209 = vpow2.f32 %v979_v59  ;;  %2992 = vmatpush3.msra.mxu1 %v994_v60  ;;  %v1531_v60 = vsel %vm1482_vm4, %v808_v55, 0 }
 0x429   : > { %3001 = vmatprep.subr.mxu1 %v3361_v17  ;;  %v1149_v1 = vpop.permute.xlu1 %1148 }
 0x42d   : > { %v1227_v4 = vpop.permute.xlu1 %1226 }
 0x430   : > { %v3208_v61 = vpop.eup %3207 }
 0x431   : > { %v981_v62 = vsel %vm815_vm3, %v3208_v61, 0.0 }
 0x432   : > { %v3210_v63 = vpop.eup %3209  ;;  %982 = vadd.xlane.f32.xlu0 %v981_v62 }
 0x433   : > { %v984_v0 = vsel %vm815_vm3, %v3210_v63, 0.0 }
 0x434   : > { %985 = vadd.xlane.f32.xlu1 %v984_v0 }
 0x445   : > { %1224 = vrot.lane.b32.xlu1 %v3640_v46, %s3366_s24 }
 0x448   : > { %1146 = vrot.lane.b32.xlu0 %v3633_v45, %s3366_s24 }
 0x4bf   : > { %v983_v5 = vpop.xlane.xlu0 %982 }
 0x4c0   : > { %3211 = vrcp.f32 %v983_v5 }
 0x4c1   : > { %v986_v6 = vpop.xlane.xlu1 %985 }
 0x4c2   : > { %3213 = vrcp.f32 %v986_v6 }
 0x4c3   : > { %v1147_v11 = vpop.permute.xlu0 %1146 }
 0x4c5   : > { %v1225_v12 = vpop.permute.xlu1 %1224 }
 0x4ca   : > { %v3212_v7 = vpop.eup %3211 }
 0x4cb   : > { %v3661_v8 = vmul.f32 %v3212_v7, %v3208_v61 }
 0x4cc   : > { %v3214_v9 = vpop.eup %3213 }
 0x4cd   : > { %v3663_v10 = vmul.f32 %v3214_v9, %v3210_v63  ;;  %2994 = vmatmul.mubr.msk.f32.vlgmr.msra.gmra.mrb[2].mxu1 %vm815_vm3, %v3661_v8 }
 0x4ce   : > { %3002 = vmatpush3.xpose.msk.msra.mxu1 %vm815_vm3, %v1149_v1  ;;  %3003 = vmatprep.mubr.msk.f32.mxu1 %vm3362_vm2, %v3361_v17 }
 0x4cf   : > { %2999 = vmatmul.mubr.msk.f32.vlgmr.msra.gmra.mrb[6].mxu0 %vm815_vm3, %v3663_v10  ;;  %3011 = vmatprep.subr.mxu1 %v3361_v17 }
 0x4d0   : > { %3007 = vmatpush3.xpose.msk.msra.mxu0 %vm815_vm3, %v1227_v4  ;;  %3008 = vmatprep.mubr.msk.f32.mxu0 %vm3362_vm2, %v3361_v17 }
 0x4d1   : > { %3004 = vmatmul.mubr.msk.f32.vlgmr.msra.gmra.mrb[4].mxu1 %vm815_vm3, %v1147_v11  ;;  %3016 = vmatprep.subr.mxu0 %v3361_v17 }
 0x4d2   : > { %3013 = vmatprep.mubr.msk.f32.mxu1 %vm3362_vm2, %v3361_v17 }
 0x4d3   : > { %3009 = vmatmul.mubr.msk.f32.vlgmr.msra.gmra.mrb[8].mxu0 %vm815_vm3, %v1225_v12 }
 0x4d4   : > { %3018 = vmatprep.mubr.msk.f32.mxu0 %vm3362_vm2, %v3361_v17 }
 0x5a0   : > { %v3683_v13 = vpop.f32.mrb[2].mxu1 }
 0x5a1   : > { %v2995_v14 = vpop.f32.mrb[3].mxu1 }
 0x5a2   : > { %v3685_v15 = vpop.f32.mrb[6].mxu0 }
 0x5a3   : > { %v1145_v16 = vpack.c.bf16 %v3685_v15, %v3683_v13  ;;  %v3000_v18 = vpop.f32.mrb[7].mxu0 }
 0x5a4   : > { %v1220_v19 = vpop.f32.mrb[4].mxu1 }
 0x5a5   : > { %v3005_v20 = vpop.f32.mrb[5].mxu1  ;;  %v1302_v21 = vsel %vm815_vm3, %v1220_v19, -inf }
 0x5a6   : > { %1303 = vmax.xlane.f32.xlu0 %v1302_v21  ;;  %v1298_v22 = vpop.f32.mrb[8].mxu0 }
 0x5a7   : > { %v3010_v23 = vpop.f32.mrb[9].mxu0  ;;  %v1305_v24 = vsel %vm815_vm3, %v1298_v22, -inf }
 0x5a8   : > { %1306 = vmax.xlane.f32.xlu1 %v1305_v24 }
 0x5b9   : > { %1402 = vrot.lane.b32.xlu1 %v3627_v41, %s3367_s19 }
 0x5bd   : > { %1654 = vrot.lane.b32.xlu1 %v3627_v41, %s3368_s23 }
 0x5c1   : > { %1652 = vrot.lane.b32.xlu1 %v3640_v46, %s3369_s30 }
 0x5c5   : > { %1574 = vrot.lane.b32.xlu1 %v3633_v45, %s3369_s30  ;;  %s2910_s30 = sshll.u32 %s3351_s16, 7  ;;  %s3374_s16 = smov [#allocation4]  }
 0x5c6   : > { %s3255_s24 = sshll.u32 %s3374_s16, 4  ;;  %s3256_s24 = int_to_ptr.vmem [resolvable:$false] %s3255_s24 }
 0x5c9   : > { %1958 = vrot.lane.b32.xlu1 %v3625_v38, %s3370_s22 }
 0x633   : > { %v1304_v25 = vpop.xlane.xlu0 %1303 }
 0x634   : > { %v1308_v26 = vsub.f32 %v1220_v19, %v1304_v25 }
 0x635   : > { %v1307_v27 = vpop.xlane.xlu1 %1306 }
 0x636   : > { %v1310_v28 = vmul.f32 1.442695, %v1308_v26  ;;  %v1309_v29 = vsub.f32 %v1298_v22, %v1307_v27 }
 0x638   : > { %3215 = vpow2.f32 %v1310_v28  ;;  %v1312_v30 = vmul.f32 1.442695, %v1309_v29 }
 0x639   : > { %v1403_v31 = vpop.permute.xlu1 %1402 }
 0x63a   : > { %3217 = vpow2.f32 %v1312_v30  ;;  %3017 = vmatpush3.msra.mxu0 %v1403_v31 }
 0x63b   : > { %3021 = vmatprep.subr.bf16.mxu0 %v3361_v17 }
 0x63d   : > { %v1655_v39 = vpop.permute.xlu1 %1654 }
 0x641   : > { %v1653_v43 = vpop.permute.xlu1 %1652 }
 0x642   : > { %v3216_v32 = vpop.eup %3215 }
 0x643   : > { %v1314_v33 = vsel %vm815_vm3, %v3216_v32, 0.0 }
 0x644   : > { %v3218_v34 = vpop.eup %3217  ;;  %1315 = vadd.xlane.f32.xlu0 %v1314_v33 }
 0x645   : > { %v1317_v35 = vsel %vm815_vm3, %v3218_v34, 0.0  ;;  %v1575_v50 = vpop.permute.xlu1 %1574 }
 0x648   : > { %1318 = vadd.xlane.f32.xlu0 %v1317_v35 }
 0x65e   : > { %1326 = vrot.lane.b32.xlu0 %v3625_v38, %s3367_s19  ;;  %s3257_s19 = scalar_lea.vmem %s3256_s24, 512 }
 0x662   : > { %1576 = vrot.lane.b32.xlu0 %v3625_v38, %s3368_s23 }
 0x6d1   : > { %v1316_v36 = vpop.xlane.xlu0 %1315 }
 0x6d2   : > { %3219 = vrcp.f32 %v1316_v36 }
 0x6d5   : > { %v1319_v37 = vpop.xlane.xlu0 %1318 }
 0x6d6   : > { %3221 = vrcp.f32 %v1319_v37 }
 0x6d9   : > { %v1327_v40 = vpop.permute.xlu0 %1326 }
 0x6da   : > { %3012 = vmatpush3.msra.mxu1 %v1327_v40 }
 0x6db   : > { %3033 = vmatprep.subr.mxu1 %v3361_v17 }
 0x6dc   : > { %v3220_v42 = vpop.eup %3219 }
 0x6dd   : > { %v3703_v44 = vmul.f32 %v3220_v42, %v3216_v32  ;;  %v1577_v48 = vpop.permute.xlu0 %1576 }
 0x6df   : > { %3014 = vmatmul.mubr.msk.f32.vlgmr.msra.gmra.mrb[6].mxu1 %vm815_vm3, %v3703_v44 }
 0x6e0   : > { %v3222_v47 = vpop.eup %3221  ;;  %3035 = vmatprep.mubr.msk.f32.mxu1 %vm3362_vm2, %v3361_v17 }
 0x6e1   : > { %v3709_v49 = vmul.f32 %v3222_v47, %v3218_v34  ;;  %3034 = vmatpush3.xpose.msk.msra.mxu1 %vm815_vm3, %v1577_v48 }
 0x6e2   : > { %3043 = vmatprep.subr.mxu1 %v3361_v17 }
 0x6e3   : > { %3019 = vmatmul.mubr.msk.f32.vlgmr.msra.gmra.mrb[10].mxu0 %vm815_vm3, %v3709_v49  ;;  %v1325_v24 = vadd.f32 %v3709_v49, %v3663_v10 }
 0x6e4   : > { %3036 = vmatmul.mubr.msk.f32.vlgmr.msra.gmra.mrb[8].mxu1 %vm815_vm3, %v1575_v50  ;;  %3023 = vmatprep.mubr.msk.bf16.mxu0 %vm3362_vm2, %v3361_v17 }
 0x6e5   : > { %3045 = vmatprep.mubr.msk.f32.mxu1 %vm3362_vm2, %v3361_v17  ;;  %3022 = vmatpush3.bf16.msra.mxu0 %v1484_v52 }
 0x6e6   : > { %3027 = vmatprep.subr.bf16.mxu0 %v3361_v17 }
 0x7b2   : > { %v1398_v53 = vpop.f32.mrb[6].mxu1 }
 0x7b3   : > { %v3015_v54 = vpop.f32.mrb[7].mxu1 }
 0x7b6   : > { %v1474_v56 = vpop.f32.mrb[10].mxu0 }
 0x7b7   : > { %v1478_v57 = vpack.c.bf16 %v1474_v56, %v1398_v53  ;;  %v3020_v58 = vpop.f32.mrb[11].mxu0  ;;  %v3724_v59 = vpop.f32.mrb[8].mxu1 }
 0x7b8   : > { %v3037_v61 = vpop.f32.mrb[9].mxu1 }
 0x7b9   : > { %3024 = vmatmul.mubr.msk.bf16.vlgmr.msra.gmra.mrb[12].mxu0 %vm815_vm3, %v1478_v57 }
 0x7ba   : > { %3028 = vmatpush3.bf16.msra.mxu0 %v1531_v60  ;;  %3029 = vmatprep.mubr.msk.bf16.mxu0 %vm3362_vm2, %v3361_v17 }
 0x7bb   : > { %3038 = vmatprep.subr.mxu0 %v3361_v17 }
 0x7c1   : > { %3030 = vmatmul.mubr.msk.bf16.vlgmr.msra.gmra.mrb[16].mxu0 %vm815_vm3, %v1145_v16 }
 0x7c2   : > { %3040 = vmatprep.mubr.msk.f32.mxu0 %vm3362_vm2, %v3361_v17 }
 0x7c3   : > { %3039 = vmatpush3.xpose.msk.msra.mxu0 %vm815_vm3, %v1655_v39  ;;  %v1324_v39 = vadd.f32 %v3703_v44, %v3661_v8  ;;  %v810_v8 = vld [vmem:[%s4022_s28 + $0x8] sm:$0xf] }
 0x7c4   : > { %3048 = vmatprep.subr.mxu0 %v3361_v17  ;;  %v1911_v44 = vsel %vm1482_vm4, %v810_v8, 0  ;;  %v3194_v8 = vld [vmem:[%s3560_s3 + $0x8] sm:$0xff]  }
 0x7c9   : > { %3041 = vmatmul.mubr.msk.f32.vlgmr.msra.gmra.mrb[20].mxu0 %vm815_vm3, %v1653_v43 }
 0x7ca   : > { %3050 = vmatprep.mubr.msk.f32.mxu0 %vm3362_vm2, %v3361_v17 }
 0x88c   : > { %v1520_v62 = vpop.f32.mrb[12].mxu0 }
 0x88d   : > { %v3025_v63 = vpop.f32.mrb[13].mxu0 }
 0x88e   : > { %v1523_v0 = vpop.f32.mrb[14].mxu0 }
 0x88f   : > { %v3026_v1 = vpop.f32.mrb[15].mxu0 }
 0x894   : > { %v1567_v4 = vpop.f32.mrb[16].mxu0 }
 0x895   : > { %v3742_v5 = vadd.f32 %v1567_v4, %v1520_v62  ;;  %v3031_v6 = vpop.f32.mrb[17].mxu0 }
 0x896   : > { %v1570_v7 = vpop.f32.mrb[18].mxu0 }
 0x897   : > { %v3744_v9 = vadd.f32 %v1570_v7, %v1523_v0  ;;  %v3032_v11 = vpop.f32.mrb[19].mxu0 }
 0x89c   : > { %v1726_v12 = vpop.f32.mrb[20].mxu0 }
 0x89d   : > { %v3042_v13 = vpop.f32.mrb[21].mxu0  ;;  %v1733_v14 = vsel %vm815_vm3, %v1726_v12, -inf }
 0x89e   : > { %1734 = vmax.xlane.f32.xlu0 %v1733_v14 }
 0x8b4   : > { %1830 = vrot.lane.b32.xlu0 %v3627_v41, %s3371_s27 }
 0x8b8   : > { %1956 = vrot.lane.b32.xlu0 %v3633_v45, %s3372_s15  ;;  %v1730_v45 = vsel %vm815_vm3, %v3724_v59, -inf }
 0x8bc   : > { %2034 = vrot.lane.b32.xlu0 %v3640_v46, %s3372_s15  ;;  %v1959_v46 = vpop.permute.xlu1 %1958 }
 0x92b   : > { %v1735_v15 = vpop.xlane.xlu0 %1734 }
 0x92c   : > { %v1737_v16 = vsub.f32 %v1726_v12, %v1735_v15 }
 0x92e   : > { %v1740_v18 = vmul.f32 1.442695, %v1737_v16 }
 0x92f   : > { %v1831_v19 = vpop.permute.xlu0 %1830 }
 0x930   : > { %3223 = vpow2.f32 %v1740_v18  ;;  %3049 = vmatpush3.msra.mxu0 %v1831_v19  ;;  %v811_v19 = vld [vmem:[%s4022_s28 + $0xc] sm:$0xf] }
 0x931   : > { %3059 = vmatprep.subr.mxu0 %v3361_v17 }
 0x933   : > { %v1957_v27 = vpop.permute.xlu0 %1956 }
 0x937   : > { %v2035_v10 = vpop.permute.xlu0 %2034 }
 0x93a   : > { %v3224_v20 = vpop.eup %3223 }
 0x93b   : > { %v1745_v21 = vsel %vm815_vm3, %v3224_v20, 0.0 }
 0x93c   : > { %1746 = vadd.xlane.f32.xlu1 %v1745_v21 }
 0x94d   : > { %2036 = vrot.lane.b32.xlu1 %v3627_v41, %s3370_s22 }
 0x971   : > { %1731 = vmax.xlane.f32.xlu1 %v1730_v45 }
 0x9c9   : > { %v1747_v22 = vpop.xlane.xlu1 %1746 }
 0x9ca   : > { %3225 = vrcp.f32 %v1747_v22 }
 0x9cd   : > { %v2037_v28 = vpop.permute.xlu1 %2036 }
 0x9d4   : > { %v3226_v23 = vpop.eup %3225 }
 0x9d5   : > { %v1751_v25 = vmul.f32 %v3226_v23, %v3224_v20  ;;  %v2293_v20 = vsel %vm1482_vm4, %v811_v19, 0  ;;  %v2893_v19 = vld [vmem:[%s669_s5] ss:$0 sm:$0xff] }
 0x9d7   : > { %v3759_v26 = vadd.f32 %v1751_v25, %v1325_v24  ;;  %3051 = vmatmul.mubr.msk.f32.vlgmr.msra.gmra.mrb[22].mxu0 %vm815_vm3, %v1751_v25 }
 0x9d8   : > { %3060 = vmatpush3.xpose.msk.msra.mxu0 %vm815_vm3, %v1959_v46  ;;  %3061 = vmatprep.mubr.msk.f32.mxu0 %vm3362_vm2, %v3361_v17 }
 0x9d9   : > { %3064 = vmatprep.subr.mxu0 %v3361_v17 }
 0x9db   : > { %3062 = vmatmul.mubr.msk.f32.vlgmr.msra.gmra.mrb[24].mxu0 %vm815_vm3, %v1957_v27 }
 0x9dc   : > { %3065 = vmatpush3.xpose.msk.msra.mxu0 %vm815_vm3, %v2037_v28  ;;  %3066 = vmatprep.mubr.msk.f32.mxu0 %vm3362_vm2, %v3361_v17 }
 0x9dd   : > { %3074 = vmatprep.subr.mxu0 %v3361_v17 }
 0x9df   : > { %3067 = vmatmul.mubr.msk.f32.vlgmr.msra.gmra.mrb[26].mxu0 %vm815_vm3, %v2035_v10 }
 0x9e0   : > { %3076 = vmatprep.mubr.msk.f32.mxu0 %vm3362_vm2, %v3361_v17 }
 0x9fe   : > { %v1732_v29 = vpop.xlane.xlu1 %1731 }
 0x9ff   : > { %v1736_v30 = vsub.f32 %v3724_v59, %v1732_v29 }
 0xa01   : > { %v1738_v31 = vmul.f32 1.442695, %v1736_v30 }
 0xa03   : > { %3227 = vpow2.f32 %v1738_v31 }
 0xa0d   : > { %v3228_v32 = vpop.eup %3227 }
 0xa0e   : > { %v1742_v33 = vsel %vm815_vm3, %v3228_v32, 0.0 }
 0xa0f   : > { %1743 = vadd.xlane.f32.xlu0 %v1742_v33 }
 0xa25   : > { %1754 = vrot.lane.b32.xlu0 %v3625_v38, %s3371_s27  ;;  %s4026_s27 = sld [smem:[#allocation23_spill]] }
 0xa29   : > { %2212 = vrot.lane.b32.xlu0 %v3627_v41, %s3373_s21 }
 0xa2b   : > { %s3876_s15 = scalar_lea.hbm %s4026_s27, %s2910_s30 }
 0xa9c   : > { %v1744_v34 = vpop.xlane.xlu0 %1743 }
 0xa9d   : > { %3229 = vrcp.f32 %v1744_v34 }
 0xaa0   : > { %v1755_v35 = vpop.permute.xlu0 %1754 }
 0xaa1   : > { %3044 = vmatpush3.msra.mxu1 %v1755_v35 }
 0xaa2   : > { %3053 = vmatprep.subr.bf16.mxu1 %v3361_v17 }
 0xaa4   : > { %v2213_v36 = vpop.permute.xlu0 %2212 }
 0xaa5   : > { %3075 = vmatpush3.msra.mxu0 %v2213_v36 }
 0xaa6   : > { %3085 = vmatprep.subr.bf16.mxu0 %v3361_v17 }
 0xaa7   : > { %v3230_v37 = vpop.eup %3229 }
 0xaa8   : > { %v1750_v40 = vmul.f32 %v3230_v37, %v3228_v32 }
 0xaaa   : > { %v1752_v42 = vadd.f32 %v1750_v40, %v1324_v39  ;;  %3046 = vmatmul.mubr.msk.f32.vlgmr.msra.gmra.mrb[10].mxu1 %vm815_vm3, %v1750_v40  ;;  %v1902_v41 = vpop.f32.mrb[22].mxu0 }
 0xaab   : > { %v3052_v43 = vpop.f32.mrb[23].mxu0  ;;  %3055 = vmatprep.mubr.msk.bf16.mxu1 %vm3362_vm2, %v3361_v17  ;;  %3054 = vmatpush3.bf16.msra.mxu1 %v1911_v44 }
 0xaac   : > { %3069 = vmatprep.subr.mxu1 %v3361_v17 }
 0xaae   : > { %v2030_v47 = vpop.f32.mrb[24].mxu0 }
 0xaaf   : > { %v3063_v48 = vpop.f32.mrb[25].mxu0  ;;  %v2112_v49 = vsel %vm815_vm3, %v2030_v47, -inf }
 0xab0   : > { %2113 = vmax.xlane.f32.xlu1 %v2112_v49 }
 0xab2   : > { %v2108_v50 = vpop.f32.mrb[26].mxu0 }
 0xab3   : > { %v3068_v51 = vpop.f32.mrb[27].mxu0  ;;  %v2115_v52 = vsel %vm815_vm3, %v2108_v50, -inf }
 0xab4   : > { %2116 = vmax.xlane.f32.xlu1 %v2115_v52  ;;  %v3193_v52 = vld [vmem:[%s3560_s3] sm:$0xff]  }
 0xb3d   : > { %v2114_v53 = vpop.xlane.xlu1 %2113 }
 0xb3e   : > { %v2118_v54 = vsub.f32 %v2030_v47, %v2114_v53 }
 0xb40   : > { %v2120_v55 = vmul.f32 1.442695, %v2118_v54 }
 0xb41   : > { %v2117_v56 = vpop.xlane.xlu1 %2116 }
 0xb42   : > { %3231 = vpow2.f32 %v2120_v55  ;;  %v2119_v57 = vsub.f32 %v2108_v50, %v2117_v56 }
 0xb44   : > { %v2122_v58 = vmul.f32 1.442695, %v2119_v57 }
 0xb46   : > { %3233 = vpow2.f32 %v2122_v58 }
 0xb4c   : > { %v3232_v59 = vpop.eup %3231 }
 0xb4d   : > { %v2124_v60 = vsel %vm815_vm3, %v3232_v59, 0.0 }
 0xb4e   : > { %2125 = vadd.xlane.f32.xlu1 %v2124_v60  ;;  %v2891_v60 = vld [vmem:[%s658_s2] ss:$0 sm:$0xff] }
 0xb50   : > { %v3234_v61 = vpop.eup %3233 }
 0xb51   : > { %v2127_v62 = vsel %vm815_vm3, %v3234_v61, 0.0 }
 0xb52   : > { %2128 = vadd.xlane.f32.xlu1 %v2127_v62 }
 0xb63   : > { %2136 = vrot.lane.b32.xlu1 %v3625_v38, %s3373_s21  ;;  %s2630_s21 = sshll.u32 %s3576_s26, 4  ;;  %s3879_s21 = int_to_ptr.vmem [resolvable:$true] %s2630_s21 }
 0xb64   : > { %p3258_p3 = scmp.lt.s32.totalorder %s3879_s21, %s3256_s24 }
 0xb7d   : > { %v1826_v63 = vpop.f32.mrb[10].mxu1 }
 0xb7e   : > { %v1906_v0 = vpack.c.bf16 %v1902_v41, %v1826_v63  ;;  %v3047_v1 = vpop.f32.mrb[11].mxu1 }
 0xb80   : > { %3056 = vmatmul.mubr.msk.bf16.vlgmr.msra.gmra.mrb[12].mxu1 %vm815_vm3, %v1906_v0  ;;  %v2892_v0 = vld [vmem:[%s661_s18] ss:$0 sm:$0xff] }
 0xb81   : > { %3071 = vmatprep.mubr.msk.f32.mxu1 %vm3362_vm2, %v3361_v17 }
 0xbdb   : > { %v2126_v4 = vpop.xlane.xlu1 %2125 }
 0xbdc   : > { %3235 = vrcp.f32 %v2126_v4 }
 0xbdf   : > { %v2129_v6 = vpop.xlane.xlu1 %2128 }
 0xbe0   : > { %3237 = vrcp.f32 %v2129_v6 }
 0xbe3   : > { %v2137_v7 = vpop.permute.xlu1 %2136 }
 0xbe4   : > { %3070 = vmatpush3.msra.mxu1 %v2137_v7 }
 0xbe5   : > { %3079 = vmatprep.subr.bf16.mxu1 %v3361_v17 }
 0xbe6   : > { %v3236_v38 = vpop.eup %3235 }
 0xbe7   : > { %v2132_v11 = vmul.f32 %v3236_v38, %v3232_v59  ;;  %v3195_v38 = vld [vmem:[%s3570_s17] sm:$0xff]  }
 0xbe9   : > { %v2134_v12 = vadd.f32 %v2132_v11, %v1752_v42  ;;  %3072 = vmatmul.mubr.msk.f32.vlgmr.msra.gmra.mrb[16].mxu1 %vm815_vm3, %v2132_v11  ;;  %v3196_v11 = vld [vmem:[%s3570_s17 + $0x8] sm:$0xff]  }
 0xbea   : > { %v3238_v13 = vpop.eup %3237  ;;  %3081 = vmatprep.mubr.msk.bf16.mxu1 %vm3362_vm2, %v3361_v17  ;;  %3080 = vmatpush3.bf16.msra.mxu1 %v2293_v20 }
 0xbeb   : > { %v2594_v14 = vmul.f32 0.25, %v2134_v12  ;;  %v2133_v15 = vmul.f32 %v3238_v13, %v3234_v61  ;;  %3093 = vmatprep.subr.bf16.mxu1 %v3361_v17  ;;  %v3197_v12 = vld [vmem:[%s3570_s17 + $0x10] sm:$0xff]   ;;  %v3198_v13 = vld [vmem:[%s3570_s17 + $0x18] sm:$0xff]  }
 0xbed   : > { %2596 = vst.msk [vmem:[%s3576_s26] sm:$0xff] %vm815_vm3, %v2594_v14  ;;  %v2135_v16 = vadd.f32 %v2133_v15, %v3759_v26  ;;  %3077 = vmatmul.mubr.msk.f32.vlgmr.msra.gmra.mrb[28].mxu0 %vm815_vm3, %v2133_v15  ;;  %v3199_v14 = vld [vmem:[%s3570_s17 + $0x20] sm:$0xff]   ;;  %v3200_v15 = vld [vmem:[%s3570_s17 + $0x28] sm:$0xff]  }
 0xbee   : > { %3089 = vmatprep.mubr.msk.bf16.mxu0 %vm3362_vm2, %v3361_v17  ;;  %3086 = vmatpush3.bf16.msra.mxu0 %v3193_v52 }
 0xbef   : > { %v2595_v18 = vmul.f32 0.25, %v2135_v16  ;;  %3087 = vmatprep.subr.bf16.mxu0 %v3361_v17  ;;  %v3201_v16 = vld [vmem:[%s3570_s17 + $0x30] sm:$0xff]  }
 0xbf1   : > { %2597 = vst.msk [vmem:[%s3576_s26 + $0x8] sm:$0xff] %vm815_vm3, %v2595_v18  ;;  %v3202_v18 = vld [vmem:[%s3570_s17 + $0x38] sm:$0xff]   ;;  %s4024_s17 = sld [smem:[#allocation9_spill]] }
 0xbf2   : > { %3088 = vmatpush3.bf16.msra.mxu0 %v3194_v8 }
 0xbf7   : > { %s4027_s25 = sand.u32 1, %s4024_s17  }
 0xbf8   : > { %s3883_s14 = scalar_lea.sflag [#allocation5], %s4027_s25 }
 0xc53   : > { %v1947_v21 = vpop.f32.mrb[12].mxu1 }
 0xc54   : > { %v1954_v45 = vadd.f32 %v1947_v21, %v3742_v5  ;;  %v3057_v46 = vpop.f32.mrb[13].mxu1  ;;  %v2890_v5 = vld [vmem:[%s4023_s13] ss:$0 sm:$0xff]  ;;  %s3251_s13 = scalar_lea.vmem %s3879_s21, 256 }
 0xc55   : > { %v1950_v22 = vpop.f32.mrb[14].mxu1  ;;  %p3252_p13 = scmp.ne.s32.totalorder %s3879_s21, %s3251_s13  ;;  %p3259_p5 = scmp.lt.s32.totalorder %s3257_s19, %s3251_s13 }
 0xc56   : > { %v1955_v23 = vadd.f32 %v1950_v22, %v3744_v9  ;;  %v3058_v24 = vpop.f32.mrb[15].mxu1 }
 0xc57   : > { %p3253_p0 = pnand %p3252_p13, %p3500_p4  ;;  %p3260_p6 = por %p3259_p5, %p3258_p3 }
 0xc59   : > { %p3254_p1 = pneg %p3253_p0 }
 0xc5b   : > { %p3261_p7 = pnand %p3260_p6, %p3254_p1 }
 0xcbc   : > { %v2208_v25 = vpop.f32.mrb[16].mxu1 }
 0xcbd   : > { %v3073_v26 = vpop.f32.mrb[17].mxu1 }
 0xcc0   : > { %v2284_v27 = vpop.f32.mrb[28].mxu0 }
 0xcc1   : > { %v2288_v28 = vpack.c.bf16 %v2284_v27, %v2208_v25  ;;  %v3078_v10 = vpop.f32.mrb[29].mxu0 }
 0xcc3   : > { %3082 = vmatmul.mubr.msk.bf16.vlgmr.msra.gmra.mrb[20].mxu1 %vm815_vm3, %v2288_v28 }
 0xcc4   : > { %3109 = vmatprep.mubr.msk.bf16.mxu1 %vm3362_vm2, %v3361_v17  ;;  %3094 = vmatpush3.bf16.msra.mxu1 %v3195_v38 }
 0xcc5   : > { %3095 = vmatprep.subr.bf16.mxu1 %v3361_v17 }
 0xcc8   : > { %3096 = vmatpush3.bf16.msra.mxu1 %v3196_v11 }
 0xcc9   : > { %3097 = vmatprep.subr.bf16.mxu1 %v3361_v17 }
 0xccc   : > { %3098 = vmatpush3.bf16.msra.mxu1 %v3197_v12 }
 0xccd   : > { %3099 = vmatprep.subr.bf16.mxu1 %v3361_v17 }
 0xcd0   : > { %3100 = vmatpush3.bf16.msra.mxu1 %v3198_v13 }
 0xcd1   : > { %3101 = vmatprep.subr.bf16.mxu1 %v3361_v17 }
 0xcd4   : > { %3102 = vmatpush3.bf16.msra.mxu1 %v3199_v14 }
 0xcd5   : > { %3103 = vmatprep.subr.bf16.mxu1 %v3361_v17 }
 0xcd8   : > { %3104 = vmatpush3.bf16.msra.mxu1 %v3200_v15 }
 0xcd9   : > { %3105 = vmatprep.subr.bf16.mxu1 %v3361_v17 }
 0xcdc   : > { %3106 = vmatpush3.bf16.msra.mxu1 %v3201_v16 }
 0xcdd   : > { %3107 = vmatprep.subr.bf16.mxu1 %v3361_v17 }
 0xce0   : > { %3108 = vmatpush3.bf16.msra.mxu1 %v3202_v18 }
 0xd96   : > { %v2329_v29 = vpop.f32.mrb[20].mxu1 }
 0xd97   : > { %v2336_v30 = vadd.f32 %v2329_v29, %v1954_v45  ;;  %v3083_v31 = vpop.f32.mrb[21].mxu1 }
 0xd98   : > { %v2332_v9 = vpop.f32.mrb[22].mxu1 }
 0xd99   : > { %v2338_v32 = vadd.f32 %v2336_v30, %v3585_v2  ;;  %v2337_v33 = vadd.f32 %v2332_v9, %v1955_v23  ;;  %v3084_v34 = vpop.f32.mrb[23].mxu1 }
 0xd9b   : > { %v3825_v35 = vadd.f32 %v2890_v5, %v2338_v32  ;;  %v2339_v36 = vadd.f32 %v2337_v33, %v3587_v3 }
 0xd9d   : > { %v3828_v37 = vadd.f32 %v2890_v5, %v2339_v36  ;;  %v2351_v39 = vsel %vm694_vm1, %v3825_v35, 0.0 }
 0xd9e   : > { %2352 = vadd.xlane.f32.xlu0 %v2351_v39 }
 0xd9f   : > { %v2354_v40 = vsel %vm694_vm1, %v3828_v37, 0.0 }
 0xda0   : > { %2355 = vadd.xlane.f32.xlu1 %v2354_v40 }
 0xe2b   : > { %v2353_v42 = vpop.xlane.xlu0 %2352 }
 0xe2c   : > { %v2357_v2 = vmul.f32 0.03125, %v2353_v42 }
 0xe2d   : > { %v2356_v41 = vpop.xlane.xlu1 %2355 }
 0xe2e   : > { %v2359_v43 = vsub.f32 %v3825_v35, %v2357_v2  ;;  %v2358_v47 = vmul.f32 0.03125, %v2356_v41 }
 0xe30   : > { %v2360_v3 = vsub.f32 %v3828_v37, %v2358_v47  ;;  %v2361_v48 = vmul.f32 %v2359_v43, %v2359_v43 }
 0xe32   : > { %v2363_v49 = vsel %vm694_vm1, %v2361_v48, 0.0  ;;  %v2362_v50 = vmul.f32 %v2360_v3, %v2360_v3 }
 0xe33   : > { %2364 = vadd.xlane.f32.xlu0 %v2363_v49 }
 0xe34   : > { %v2366_v51 = vsel %vm694_vm1, %v2362_v50, 0.0 }
 0xe37   : > { %2367 = vadd.xlane.f32.xlu0 %v2366_v51 }
 0xec0   : > { %v2365_v44 = vpop.xlane.xlu0 %2364 }
 0xec1   : > { %v2369_v53 = vmul.f32 0.03125, %v2365_v44 }
 0xec3   : > { %v2371_v54 = vadd.f32 1e-05, %v2369_v53 }
 0xec4   : > { %v2368_v55 = vpop.xlane.xlu0 %2367 }
 0xec5   : > { %3239 = vrsqrt.f32 %v2371_v54  ;;  %v2370_v56 = vmul.f32 0.03125, %v2368_v55 }
 0xec7   : > { %v2372_v57 = vadd.f32 1e-05, %v2370_v56 }
 0xec9   : > { %3241 = vrsqrt.f32 %v2372_v57 }
 0xecf   : > { %v3240_v58 = vpop.eup %3239 }
 0xed0   : > { %v2375_v59 = vmul.f32 %v3240_v58, %v2359_v43 }
 0xed2   : > { %v2383_v62 = vmul.f32 %v2891_v60, %v2375_v59 }
 0xed3   : > { %v3242_v61 = vpop.eup %3241 }
 0xed4   : > { %v2376_v63 = vmul.f32 %v3242_v61, %v2360_v3  ;;  %v2391_v4 = vadd.f32 %v2892_v0, %v2383_v62 }
 0xed6   : > { %v2384_v1 = vmul.f32 %v2891_v60, %v2376_v63 }
 0xed8   : > { %v2392_v6 = vadd.f32 %v2892_v0, %v2384_v1 }
 0xeda   : > { %v2393_v7 = vpack.c.bf16 %v2392_v6, %v2391_v4 }
 0xedc   : > { %3090 = vmatmul.mubr.msk.bf16.vlgmr.msra.gmra.mrb[32].mxu0 %vm694_vm1, %v2393_v7 }
 0xfaf   : > { %v2454_v20 = vpop.f32.mrb[32].mxu0 }
 0xfb0   : > { %v2455_v21 = vadd.f32 %v2893_v19, %v2454_v20  ;;  %v3091_v45 = vpop.f32.mrb[33].mxu0 }
 0xfb1   : > { %v2457_v46 = vpop.f32.mrb[34].mxu0 }
 0xfb2   : > { %v2897_v22 = vmul.f32 -1.702, %v2455_v21  ;;  %v2458_v23 = vadd.f32 %v2893_v19, %v2457_v46  ;;  %v3092_v24 = vpop.f32.mrb[35].mxu0 }
 0xfb4   : > { %v2465_v25 = vmul.f32 1.442695, %v2897_v22  ;;  %v2898_v26 = vmul.f32 -1.702, %v2458_v23 }
 0xfb6   : > { %3243 = vpow2.f32 %v2465_v25  ;;  %v2467_v27 = vmul.f32 1.442695, %v2898_v26 }
 0xfb8   : > { %3245 = vpow2.f32 %v2467_v27 }
 0xfc0   : > { %v3244_v17 = vpop.eup %3243 }
 0xfc1   : > { %v2469_v28 = vadd.f32 1.0, %v3244_v17 }
 0xfc2   : > { %v3246_v10 = vpop.eup %3245 }
 0xfc3   : > { %3247 = vrcp.f32 %v2469_v28  ;;  %v2470_v29 = vadd.f32 1.0, %v3246_v10 }
 0xfc5   : > { %3249 = vrcp.f32 %v2470_v29 }
 0xfcd   : > { %v3248_v30 = vpop.eup %3247 }
 0xfce   : > { %v2475_v5 = vmul.f32 %v3248_v30, %v2455_v21 }
 0xfcf   : > { %v3250_v31 = vpop.eup %3249 }
 0xfd0   : > { %v2476_v9 = vmul.f32 %v3250_v31, %v2458_v23 }
 0xfd2   : > { %v2477_v32 = vpack.c.bf16 %v2476_v9, %v2475_v5 }
 0xfd4   : > { %3110 = vmatmul.mubr.bf16.vlgmr.msra.gmra.mrb[24].mxu1 %v2477_v32 }
 0xfd5   : > { %3264 = shalt.err (!%p3261_p7)
}
 0xfd6   : > { %s3265_s26 = scalar_lea.hbm %s3876_s15, 256  ;;  %s3269_s2 = scalar_lea.hbm %s4026_s27, 512 }
 0xfd7   : > { %p3266_p9 = scmp.ne.s32.totalorder %s3876_s15, %s3265_s26  ;;  %p3270_p12 = scmp.lt.u32.totalorder %s3876_s15, %s4026_s27 }
 0xfd8   : > { %p3271_p13 = scmp.lt.u32.totalorder %s3269_s2, %s3265_s26  ;;  %p3273_p1 = scmp.lt.u32.totalorder %s3265_s26, %s3876_s15 }
 0xfd9   : > { %p3267_p10 = pnand %p3266_p9, %p3500_p4 }
 0xfda   : > { %p3272_p0 = por %p3271_p13, %p3270_p12 }
 0xfdb   : > { %p3268_p11 = pneg %p3267_p10 }
 0xfdc   : > { %p3274_p3 = por %p3273_p1, %p3272_p0 }
 0xfde   : > { %p3275_p5 = pnand %p3274_p3, %p3268_p11 }
 0xfe0   : > { %3278 = shalt.err (!%p3275_p5)
}
 0xfe1   : > { %s3375_s30 = smov 128   ;;  %s3376_s22 = smov 256   ;;  %v2899_v33 = vld [vmem:[%s677_s29] ss:$0 sm:$0xff] }
 0xfe2   : > { %s3377_s28 = smov 8   ;;  %s3378_s24 = smov [#allocation2]  }
 0xfe3   : > { %3115 = dma.vmem_to_hbm [thread:$0]  (%p3500_p4), %s3879_s21, 256, %s3876_s15, %s3883_s14, %s3375_s30, %s3376_s22, %s3377_s28  }
 0xfe4   : > { %s2612_s19 = sshll.u32 %s3378_s24, 4  ;;  %s2613_s19 = int_to_ptr.vmem [resolvable:$true] %s2612_s19 }
 0xfe5   : > { %s3279_s20 = scalar_lea.vmem %s2613_s19, 256  ;;  %p3286_p9 = scmp.lt.s32.totalorder %s2613_s19, %s2613_s19 }
 0xfe6   : > { %p3280_p4 = scmp.ne.s32.totalorder %s2613_s19, %s3279_s20  ;;  %p3287_p10 = scmp.lt.s32.totalorder %s3279_s20, %s3279_s20 }
 0xfe8   : > { %p3281_p6 = pnand %p3280_p4, %p3490_p2  ;;  %p3288_p11 = por %p3287_p10, %p3286_p9 }
 0xfea   : > { %p3282_p7 = pneg %p3281_p6 }
 0xfec   : > { %p3289_p12 = pnand %p3288_p11, %p3282_p7 }
0x10a7   : > { %v2583_v34 = vpop.f32.mrb[24].mxu1 }
0x10a8   : > { %v2584_v36 = vadd.f32 %v2899_v33, %v2583_v34  ;;  %v3111_v39 = vpop.f32.mrb[25].mxu1 }
0x10a9   : > { %v2586_v40 = vpop.f32.mrb[26].mxu1 }
0x10aa   : > { %v2590_v42 = vadd.f32 %v2584_v36, %v3825_v35  ;;  %v2587_v2 = vadd.f32 %v2899_v33, %v2586_v40  ;;  %v3112_v41 = vpop.f32.mrb[27].mxu1 }
0x10ac   : > { %2592 = vst.msk [vmem:[#allocation2] sm:$0xff] %vm694_vm1, %v2590_v42  ;;  %v2591_v43 = vadd.f32 %v2587_v2, %v3828_v37 }
0x10ae   : > { %2593 = vst.msk [vmem:[#allocation2 + $0x8] sm:$0xff] %vm694_vm1, %v2591_v43 }
0x10af   : > { %3292 = shalt.err (!%p3289_p12)
}
0x10b0   : > { %s4029_s15 = sld [smem:[#allocation22_spill]] }
0x10b6   : > { %s4030_s21 = smov %s4029_s15  ;;  %s3293_s14 = scalar_lea.hbm %s4029_s15, 256 }
0x10b7   : > { %p3294_p13 = scmp.ne.s32.totalorder %s4030_s21, %s3293_s14  ;;  %p3299_p3 = scmp.lt.u32.totalorder %s3293_s14, %s4030_s21 }
0x10b9   : > { %p3295_p0 = pnand %p3294_p13, %p3490_p2 }
0x10bb   : > { %p3296_p1 = pneg %p3295_p0 }
0x10bd   : > { %p3301_p5 = pnand %p3299_p3, %p3296_p1 }
0x10bf   : > { %3304 = shalt.err (!%p3301_p5)
}
0x10c0   : > { %3114 = dma.vmem_to_hbm [thread:$0]  (%p3490_p2), %s2613_s19, 256, %s4030_s21, [#allocation3], %s3375_s30, %s3375_s30, %s3377_s28  }
0x10c1   : > { %3330 = dma.done.wait (%p3490_p2), [#allocation3], 256  }
0x10c2   : > { %3332 = vsyncadd (%p3490_p2), [#allocation3], 4294967040 }
0x10c3 PF: > { %s4031_s22 = sld [smem:[#allocation12_spill]]  ;;  %s4032_s25 = sld [smem:[#allocation8_spill]] }
0x10c9   : > { %p3125_p4 = scmp.ge.s32.totalorder %s4031_s22, 2  ;;  %s2649_s24 = sand.u32 1, %s4032_s25  }
0x10ca   : > { %s2650_s20 = scalar_lea.sflag [#allocation5], %s2649_s24 }
0x10cb   : > { %p3120_p6 = pnand %p3125_p4, %p3507_p8 }
0x10cd   : > { %3334 = dma.done.wait (!%p3120_p6), %s2650_s20, 256  }
0x10ce   : > { %3336 = vsyncadd (!%p3120_p6), %s2650_s20, 4294967040  ;;  %s29_s18 = sadd.s32 1, %s4031_s22   ;;  %s4034_s29 = sld [smem:[#allocation9_spill]] }
0x10cf   : > { %p26_p7 = scmp.ge.s32.totalorder %s29_s18, 4   ;;  %s4035_s30 = sld [smem:[#allocation10_spill]] }
0x10d0   : > { %s4036_s15 = sld [smem:[#allocation17_spill]]  ;;  %s4037_s16 = sld [smem:[#allocation11_spill]] }
0x10d1   : > { %s4038_s17 = sld [smem:[#allocation14_spill]]  ;;  %28 = sbr.rel (!%p26_p7) target bundleno = 11 (0xb), region = 157 }
0x10d8   :  { %2655 = vsyncpa [#allocation3], 1 }
0x10d9   :  { %2657 = vsyncpa [#allocation3 + $0x1], 1 }
0x10da   :  { %2658 = vsyncpa [#allocation5], 1 }
0x10db   :  { %2660 = vsyncpa [#allocation5 + $0x1], 1 }

</bundles_post_ra>
